<compile_context>
chip_gen: v7x
topology: tpu7x:2x2x1
jax: 0.10.0
libtpu: 0.0.40
codegen_flags: <defaults>
</compile_context>

<pallas_src>
import functools
import math

import jax
import jax.numpy as jnp
from jax import lax
from jax.experimental import pallas as pl
from jax.experimental.pallas import tpu as pltpu


def _round_up(x: int, m: int) -> int:
    return ((x + m - 1) // m) * m


# ---------------------------------------------------------------------------
# Generation-aware knobs (v5e/v6e: 128 MiB VMEM, 1 TC.  v7x: 64 MiB VMEM, 2 TCs.)
# ---------------------------------------------------------------------------
def _tpu_vmem_bytes():
    try:
        return int(pltpu.get_tpu_info().vmem_capacity_bytes)
    except Exception:
        return None


_VMEM_PHYS = _tpu_vmem_bytes()
if _VMEM_PHYS is not None and _VMEM_PHYS > 64 * 1024 * 1024:
    _VMEM_LIMIT = 64 * 1024 * 1024   # v5e / v6e: generous scoped budget
    _MULTI_TC = False
else:
    _VMEM_LIMIT = 40 * 1024 * 1024   # v7x or unknown: conservative
    _MULTI_TC = True                 # keep >=2 parallel grid steps for the 2 TensorCores


_ROW_TILES = (1024, 512, 256, 128, 64, 32, 16, 8)


def _pick_row_tile(m_rows: int, cap: int = 512) -> int:
    """Largest multiple-of-8 candidate dividing m_rows (m_rows is a multiple of 8).
    On 2-TensorCore parts keep >=2 grid steps along the row axis when possible."""
    assert m_rows % 8 == 0
    cands = [t for t in _ROW_TILES if t <= cap]
    tile = next(t for t in cands if t <= m_rows and m_rows % t == 0)
    if _MULTI_TC and tile == m_rows and m_rows >= 16:
        tile = next(t for t in cands if t <= m_rows // 2 and m_rows % t == 0)
    return tile


def _pick_lane_tile(n: int) -> int:
    """Lane-major tile: a multiple of 128 dividing n, else the full dimension."""
    for t in (512, 256, 128):
        if n % t == 0:
            return t
    return n


# ---------------------------------------------------------------------------
# LayerNormalization: alpha * (x - mean) / (std + eps) + bias   (torch unbiased std)
# ---------------------------------------------------------------------------
def _layernorm_kernel(alpha_ref, bias_ref, x_ref, o_ref, *, eps: float, hidden: int):
    x = x_ref[...].astype(jnp.float32)                      # (br, hidden)
    mean = jnp.sum(x, axis=-1, keepdims=True) * (1.0 / hidden)
    diff = x - mean
    var = jnp.sum(diff * diff, axis=-1, keepdims=True) * (1.0 / (hidden - 1))
    std = jnp.sqrt(var)
    inv = pl.reciprocal(std + jnp.float32(eps), approx=False)   # (br, 1)
    scale = alpha_ref[0] * inv                                  # fold alpha into per-row scale
    o_ref[...] = (diff * scale + bias_ref[0]).astype(o_ref.dtype)


def pallas_layer_norm(x2d, alpha, bias, *, eps: float, out_dtype):
    m_rows, hidden = x2d.shape
    assert hidden >= 2, "unbiased std needs hidden >= 2"
    # ~2 MiB f32 input tile -> in+out double-buffered stays well inside budget.
    cap = max(8, min(1024, (2 * 1024 * 1024) // max(1, hidden * 4)))
    br = _pick_row_tile(m_rows, cap=cap)

    kernel = functools.partial(_layernorm_kernel, eps=float(eps), hidden=hidden)
    return pl.pallas_call(
        kernel,
        out_shape=jax.ShapeDtypeStruct((m_rows, hidden), out_dtype),
        grid=(m_rows // br,),
        in_specs=[
            pl.BlockSpec(memory_space=pltpu.MemorySpace.SMEM),   # alpha (1,)
            pl.BlockSpec(memory_space=pltpu.MemorySpace.SMEM),   # bias  (1,)
            pl.BlockSpec((br, hidden), lambda i: (i, 0)),
        ],
        out_specs=pl.BlockSpec((br, hidden), lambda i: (i, 0)),
        compiler_params=pltpu.CompilerParams(
            dimension_semantics=("parallel",),
            vmem_limit_bytes=_VMEM_LIMIT,
        ),
    )(alpha.astype(jnp.float32), bias.astype(jnp.float32), x2d)


# ---------------------------------------------------------------------------
# Linear: y = [relu](x @ W + b) [+ residual]   (bf16 operands, f32 accumulation)
# ---------------------------------------------------------------------------
def _linear_kernel(*refs, apply_relu: bool, has_residual: bool):
    if has_residual:
        x_ref, w_ref, b_ref, r_ref, o_ref, acc_ref = refs
    else:
        x_ref, w_ref, b_ref, o_ref, acc_ref = refs
        r_ref = None
    k = pl.program_id(2)

    @pl.when(k == 0)
    def _():
        acc_ref[...] = jnp.zeros_like(acc_ref)

    acc_ref[...] += jnp.dot(x_ref[...], w_ref[...], preferred_element_type=jnp.float32)

    @pl.when(k == pl.num_programs(2) - 1)
    def _():
        out = acc_ref[...] + b_ref[...].astype(jnp.float32)
        if apply_relu:
            out = jnp.maximum(out, 0.0)
        if r_ref is not None:
            out = out + r_ref[...].astype(jnp.float32)      # fused residual add (f32)
        o_ref[...] = out.astype(o_ref.dtype)


def pallas_linear(x2d, w, b2d, *, relu: bool = False, residual=None, out_dtype=None):
    m_rows, k_dim = x2d.shape
    kw, n_dim = w.shape
    assert kw == k_dim and b2d.shape == (1, n_dim)
    out_dtype = out_dtype if out_dtype is not None else x2d.dtype

    tm = _pick_row_tile(m_rows, cap=512)
    tn = _pick_lane_tile(n_dim)
    tk = _pick_lane_tile(k_dim)

    inputs = [x2d, w, b2d]
    in_specs = [
        pl.BlockSpec((tm, tk), lambda i, j, k: (i, k)),
        pl.BlockSpec((tk, tn), lambda i, j, k: (k, j)),
        pl.BlockSpec((1, tn), lambda i, j, k: (0, j)),
    ]
    has_residual = residual is not None
    if has_residual:
        assert residual.shape == (m_rows, n_dim)
        inputs.append(residual)
        in_specs.append(pl.BlockSpec((tm, tn), lambda i, j, k: (i, j)))

    kernel = functools.partial(_linear_kernel, apply_relu=relu, has_residual=has_residual)
    return pl.pallas_call(
        kernel,
        out_shape=jax.ShapeDtypeStruct((m_rows, n_dim), out_dtype),
        grid=(m_rows // tm, n_dim // tn, k_dim // tk),
        in_specs=in_specs,
        out_specs=pl.BlockSpec((tm, tn), lambda i, j, k: (i, j)),
        scratch_shapes=[pltpu.VMEM((tm, tn), jnp.float32)],
        compiler_params=pltpu.CompilerParams(
            dimension_semantics=("parallel", "parallel", "arbitrary"),
            vmem_limit_bytes=_VMEM_LIMIT,
        ),
    )(*inputs)


# ---------------------------------------------------------------------------
# Multi-head attention core: one grid step per batch, all heads packed per step.
# Reads the fused QKV slab directly (no head transposes); mask rebuilt from lengths.
# ---------------------------------------------------------------------------
def _attention_kernel(lens_ref, qkv_ref, o_ref, *, heads: int, d_k: int, sm_scale: float):
    b = pl.program_id(0)
    n_valid = lens_ref[b]                                   # scalar int32 (SMEM)
    qkv = qkv_ref[...]                                      # (Sp, 3*d_model) bf16
    seq = qkv.shape[0]
    d_model = heads * d_k

    # key position j participates iff j < n_valid  (== torch masked_fill(mask==0, -1e9))
    key_valid = lax.broadcasted_iota(jnp.int32, (seq, seq), 1) < n_valid

    ctx_parts = []
    for hh in range(heads):                                 # static unroll over heads
        lo = hh * d_k
        # fold 1/sqrt(d_k) into q before the QK^T matmul
        q_h = (qkv[:, lo:lo + d_k].astype(jnp.float32) * jnp.float32(sm_scale)
               ).astype(jnp.bfloat16)
        k_h = qkv[:, d_model + lo:d_model + lo + d_k]
        v_h = qkv[:, 2 * d_model + lo:2 * d_model + lo + d_k]

        scores = lax.dot_general(q_h, k_h, (((1,), (1,)), ((), ())),
                                 preferred_element_type=jnp.float32)     # (Sp, Sp)
        scores = jnp.where(key_valid, scores, jnp.float32(-1e9))
        scores = scores - jnp.max(scores, axis=-1, keepdims=True)
        p = jnp.exp(scores)
        p = p * pl.reciprocal(jnp.sum(p, axis=-1, keepdims=True), approx=True)
        ctx_parts.append(jnp.dot(p.astype(jnp.bfloat16), v_h,
                                 preferred_element_type=jnp.float32))    # (Sp, d_k)

    # single lane-dense (Sp, d_model) store
    o_ref[...] = jnp.concatenate(ctx_parts, axis=-1).astype(o_ref.dtype)


def pallas_attention(qkv2d, lens, *, batch: int, seq: int, heads: int, d_k: int, out_dtype):
    d_model = heads * d_k
    assert qkv2d.shape == (batch * seq, 3 * d_model)
    kernel = functools.partial(_attention_kernel, heads=heads, d_k=d_k,
                               sm_scale=1.0 / math.sqrt(d_k))
    return pl.pallas_call(
        kernel,
        out_shape=jax.ShapeDtypeStruct((batch * seq, d_model), out_dtype),
        grid_spec=pltpu.PrefetchScalarGridSpec(
            num_scalar_prefetch=1,                          # per-batch valid lengths
            grid=(batch,),
            in_specs=[pl.BlockSpec((seq, 3 * d_model), lambda b, lens_ref: (b, 0))],
            out_specs=pl.BlockSpec((seq, d_model), lambda b, lens_ref: (b, 0)),
        ),
        compiler_params=pltpu.CompilerParams(
            dimension_semantics=("parallel",),
            vmem_limit_bytes=_VMEM_LIMIT,
        ),
    )(lens, qkv2d)


# ---------------------------------------------------------------------------
# Parameter preparation (done once, outside the forward path): fuse QKV, cast to bf16.
# ---------------------------------------------------------------------------
def prepare_params(raw):
    a, f = raw["attn"], raw["ffn"]

    def bias2d(b):
        return jnp.asarray(b, jnp.float32).reshape(1, -1)

    return {
        "ln0_alpha": jnp.asarray(raw["ln0_alpha"], jnp.float32).reshape(-1)[:1],
        "ln0_bias": jnp.asarray(raw["ln0_bias"], jnp.float32).reshape(-1)[:1],
        "ln1_alpha": jnp.asarray(raw["ln1_alpha"], jnp.float32).reshape(-1)[:1],
        "ln1_bias": jnp.asarray(raw["ln1_bias"], jnp.float32).reshape(-1)[:1],
        "w_qkv": jnp.concatenate([a["w_q"], a["w_k"], a["w_v"]], axis=1).astype(jnp.bfloat16),
        "b_qkv": bias2d(jnp.concatenate([a["b_q"], a["b_k"], a["b_v"]])),
        "w_o": a["w_o"].astype(jnp.bfloat16),
        "b_o": bias2d(a["b_o"]),
        "w1": f["w1"].astype(jnp.bfloat16),
        "b1": bias2d(f["b1"]),
        "w2": f["w2"].astype(jnp.bfloat16),
        "b2": bias2d(f["b2"]),
    }


# ---------------------------------------------------------------------------
# EncoderBlock forward
# ---------------------------------------------------------------------------
def encoder_block(x, valid_len, params, h: int, eps: float = 1e-6):
    B, S, d_model = x.shape
    assert d_model % h == 0
    d_k = d_model // h
    Sp = _round_up(S, 8)

    # Pad the sequence axis ONCE; activations stay in the (B*Sp, d_model) resident layout
    # for the whole block.  Padded (zero) rows are finite after LN (== bias), are masked
    # out as attention keys, and are sliced away at the end.
    xp = jnp.pad(x.astype(jnp.float32), ((0, 0), (0, Sp - S), (0, 0))).reshape(B * Sp, d_model)
    lens = jnp.minimum(valid_len.astype(jnp.int32), S)

    # --- residual connection 0: x + W_o(MHA(LN0(x))) ---
    nx = pallas_layer_norm(xp, params["ln0_alpha"], params["ln0_bias"],
                           eps=eps, out_dtype=jnp.bfloat16)
    qkv = pallas_linear(nx, params["w_qkv"], params["b_qkv"], out_dtype=jnp.bfloat16)
    ctx = pallas_attention(qkv, lens, batch=B, seq=Sp, heads=h, d_k=d_k,
                           out_dtype=jnp.bfloat16)
    x1 = pallas_linear(ctx, params["w_o"], params["b_o"], residual=xp,
                       out_dtype=jnp.float32)

    # --- residual connection 1: x + W2(relu(W1(LN1(x)))) ---
    nx1 = pallas_layer_norm(x1, params["ln1_alpha"], params["ln1_bias"],
                            eps=eps, out_dtype=jnp.bfloat16)
    hid = pallas_linear(nx1, params["w1"], params["b1"], relu=True, out_dtype=jnp.bfloat16)
    x2 = pallas_linear(hid, params["w2"], params["b2"], residual=x1, out_dtype=jnp.float32)

    return x2.reshape(B, Sp, d_model)[:, :S, :]


# ---------------------------------------------------------------------------
# Pure-JAX reference (mirrors the PyTorch math exactly, f32)
# ---------------------------------------------------------------------------
def reference_encoder_block(x, src_mask, raw_params, h: int, eps: float = 1e-6):
    def layer_norm(t, alpha, bias):
        mean = jnp.mean(t, axis=-1, keepdims=True)
        std = jnp.std(t, axis=-1, keepdims=True, ddof=1)    # torch unbiased std
        return alpha * (t - mean) / (std + eps) + bias

    def linear(t, w, b):
        return t @ w + b

    def mha(qi, ki, vi, mask3, p):
        B, S, d_model = qi.shape
        d_k = d_model // h
        q = linear(qi, p["w_q"], p["b_q"]).reshape(B, S, h, d_k).transpose(0, 2, 1, 3)
        k = linear(ki, p["w_k"], p["b_k"]).reshape(B, S, h, d_k).transpose(0, 2, 1, 3)
        v = linear(vi, p["w_v"], p["b_v"]).reshape(B, S, h, d_k).transpose(0, 2, 1, 3)
        scores = jnp.einsum("bhqd,bhkd->bhqk", q, k) / math.sqrt(d_k)
        scores = jnp.where(mask3[:, None, :, :] == 0, -1e9, scores)
        probs = jax.nn.softmax(scores, axis=-1)
        ctx = jnp.einsum("bhqk,bhkd->bhqd", probs, v)
        ctx = ctx.transpose(0, 2, 1, 3).reshape(B, S, d_model)
        return linear(ctx, p["w_o"], p["b_o"])

    def ffn(t, p):
        return linear(jnp.maximum(linear(t, p["w1"], p["b1"]), 0.0), p["w2"], p["b2"])

    nx = layer_norm(x, raw_params["ln0_alpha"], raw_params["ln0_bias"])
    x = x + mha(nx, nx, nx, src_mask, raw_params["attn"])
    nx = layer_norm(x, raw_params["ln1_alpha"], raw_params["ln1_bias"])
    x = x + ffn(nx, raw_params["ffn"])
    return x


if __name__ == "__main__":
    key = jax.random.PRNGKey(0)
    B, S, d_model, h, d_ff = 2, 8, 32, 4, 64
    eps = 1e-6
    keys = jax.random.split(key, 8)

    def lin_init(k, fan_in, fan_out):
        kw, kb = jax.random.split(k)
        lim = 1.0 / math.sqrt(fan_in)
        w = jax.random.uniform(kw, (fan_in, fan_out), jnp.float32, -lim, lim)
        b = jax.random.uniform(kb, (fan_out,), jnp.float32, -lim, lim)
        return w, b

    w_q, b_q = lin_init(keys[0], d_model, d_model)
    w_k, b_k = lin_init(keys[1], d_model, d_model)
    w_v, b_v = lin_init(keys[2], d_model, d_model)
    w_o, b_o = lin_init(keys[3], d_model, d_model)
    w1, b1 = lin_init(keys[4], d_model, d_ff)
    w2, b2 = lin_init(keys[5], d_ff, d_model)

    raw_params = {
        # nn.Parameter(torch.ones(1)) / torch.zeros(1)
        "ln0_alpha": jnp.ones((1,), jnp.float32), "ln0_bias": jnp.zeros((1,), jnp.float32),
        "ln1_alpha": jnp.ones((1,), jnp.float32), "ln1_bias": jnp.zeros((1,), jnp.float32),
        "attn": {"w_q": w_q, "b_q": b_q, "w_k": w_k, "b_k": b_k,
                 "w_v": w_v, "b_v": b_v, "w_o": w_o, "b_o": b_o},
        "ffn": {"w1": w1, "b1": b1, "w2": w2, "b2": b2},
    }
    params = prepare_params(raw_params)

    x = jax.random.normal(keys[6], (B, S, d_model), jnp.float32)

    # src padding mask: batch 0 has 8 valid tokens, batch 1 has 6.
    valid_len = jnp.array([8, 6], jnp.int32)
    key_pos = jnp.arange(S)
    src_mask = (key_pos[None, None, :] < valid_len[:, None, None]).astype(jnp.float32)
    src_mask = jnp.broadcast_to(src_mask, (B, S, S))

    run = jax.jit(functools.partial(encoder_block, h=h, eps=eps))
    out = run(x, valid_len, params)
    out = jax.block_until_ready(out)

    ref = reference_encoder_block(x, src_mask, raw_params, h, eps=eps)
    assert out.shape == x.shape
    max_diff = float(jnp.max(jnp.abs(out - ref)))
    # bf16 MXU operands -> relaxed (but still meaningful) tolerance vs the f32 reference
    assert jnp.allclose(out, ref, atol=2e-2, rtol=2e-2), \
        f"mismatch vs reference, max diff {max_diff}"

    print("KERNEL_OK")
</pallas_src>

<mosaic_0001>
module attributes {stable_mosaic.version = 11 : i64} {
  func.func @_linear_kernel(%arg0: i32, %arg1: i32, %arg2: i32, %arg3: memref<8x32xbf16, #tpu.memory_space<vmem>>, %arg4: memref<32x96xbf16, #tpu.memory_space<vmem>>, %arg5: memref<1x96xf32, #tpu.memory_space<vmem>>, %arg6: memref<8x96xbf16, #tpu.memory_space<vmem>>, %arg7: memref<8x96xf32, #tpu.memory_space<vmem>>) attributes {dimension_semantics = [#tpu.dimension_semantics<parallel>, #tpu.dimension_semantics<parallel>, #tpu.dimension_semantics<arbitrary>], iteration_bounds = array<i64: 2, 1, 1>, scalar_prefetch = 0 : i64, scratch_operands = 1 : i64, tpu.core_type = #tpu.core_type<tc>, window_params = [{transform_indices = @transform_0, window_bounds = array<i64: 8, 32>}, {transform_indices = @transform_1, window_bounds = array<i64: 32, 96>}, {transform_indices = @transform_2, window_bounds = array<i64: 1, 96>}, {transform_indices = @transform_3, window_bounds = array<i64: 8, 96>}]} {
    %c0_i32 = arith.constant 0 : i32
    %0 = arith.cmpi eq, %arg2, %c0_i32 : i32
    %1 = arith.extui %0 : i1 to i32
    %c0_i32_0 = arith.constant 0 : i32
    %2 = arith.cmpi ne, %1, %c0_i32_0 : i32
    scf.if %2 {
      %cst_10 = arith.constant 0.000000e+00 : f32
      %12 = vector.broadcast %cst_10 : f32 to vector<8x96xf32>
      %c0_11 = arith.constant 0 : index
      %c0_12 = arith.constant 0 : index
      %13 = vector.load %arg7[%c0_11, %c0_12] : memref<8x96xf32, #tpu.memory_space<vmem>>, vector<8x96xf32>
      tpu.vector_store %arg7[%c0_11, %c0_12], %12 {strides = array<i32>} : memref<8x96xf32, #tpu.memory_space<vmem>>, vector<8x96xf32>,
    } else {
    }
    %c0 = arith.constant 0 : index
    %c0_1 = arith.constant 0 : index
    %3 = vector.load %arg7[%c0, %c0_1] : memref<8x96xf32, #tpu.memory_space<vmem>>, vector<8x96xf32>
    %c0_2 = arith.constant 0 : index
    %c0_3 = arith.constant 0 : index
    %4 = vector.load %arg3[%c0_2, %c0_3] : memref<8x32xbf16, #tpu.memory_space<vmem>>, vector<8x32xbf16>
    %c0_4 = arith.constant 0 : index
    %c0_5 = arith.constant 0 : index
    %5 = vector.load %arg4[%c0_4, %c0_5] : memref<32x96xbf16, #tpu.memory_space<vmem>>, vector<32x96xbf16>
    %cst = arith.constant dense<0.000000e+00> : vector<8x96xf32>
    %6 = tpu.matmul %4, %5, %cst {dimension_numbers = #tpu.dot_dimension_numbers<[1], [0], [0], [1], [0, 0, 1, 1], [], []>} : vector<8x32xbf16>, vector<32x96xbf16>, vector<8x96xf32> -> vector<8x96xf32>
    %7 = arith.addf %3, %6 : vector<8x96xf32>
    %c0_6 = arith.constant 0 : index
    %c0_7 = arith.constant 0 : index
    %8 = vector.load %arg7[%c0_6, %c0_7] : memref<8x96xf32, #tpu.memory_space<vmem>>, vector<8x96xf32>
    tpu.vector_store %arg7[%c0_6, %c0_7], %7 {strides = array<i32>} : memref<8x96xf32, #tpu.memory_space<vmem>>, vector<8x96xf32>,
    %c0_i32_8 = arith.constant 0 : i32
    %9 = arith.cmpi eq, %arg2, %c0_i32_8 : i32
    %10 = arith.extui %9 : i1 to i32
    %c0_i32_9 = arith.constant 0 : i32
    %11 = arith.cmpi ne, %10, %c0_i32_9 : i32
    scf.if %11 {
      %c0_10 = arith.constant 0 : index
      %c0_11 = arith.constant 0 : index
      %12 = vector.load %arg7[%c0_10, %c0_11] : memref<8x96xf32, #tpu.memory_space<vmem>>, vector<8x96xf32>
      %c0_12 = arith.constant 0 : index
      %c0_13 = arith.constant 0 : index
      %13 = vector.load %arg5[%c0_12, %c0_13] : memref<1x96xf32, #tpu.memory_space<vmem>>, vector<1x96xf32>
      %14 = vector.broadcast %13 : vector<1x96xf32> to vector<8x96xf32>
      %15 = arith.addf %12, %14 : vector<8x96xf32>
      %16 = arith.truncf %15 : vector<8x96xf32> to vector<8x96xbf16>
      %c0_14 = arith.constant 0 : index
      %c0_15 = arith.constant 0 : index
      %17 = vector.load %arg6[%c0_14, %c0_15] : memref<8x96xbf16, #tpu.memory_space<vmem>>, vector<8x96xbf16>
      tpu.vector_store %arg6[%c0_14, %c0_15], %16 {strides = array<i32>} : memref<8x96xbf16, #tpu.memory_space<vmem>>, vector<8x96xbf16>,
    } else {
    }
    return
  }
  func.func @transform_0(%arg0: i32, %arg1: i32, %arg2: i32) -> (i32, i32) {
    %c0_i32 = arith.constant 0 : i32
    return %arg0, %arg2 : i32, i32
  }
  func.func @transform_1(%arg0: i32, %arg1: i32, %arg2: i32) -> (i32, i32) {
    %c0_i32 = arith.constant 0 : i32
    return %arg2, %arg1 : i32, i32
  }
  func.func @transform_2(%arg0: i32, %arg1: i32, %arg2: i32) -> (i32, i32) {
    %c0_i32 = arith.constant 0 : i32
    %c0_i32_0 = arith.constant 0 : i32
    return %c0_i32, %arg1 : i32, i32
  }
  func.func @transform_3(%arg0: i32, %arg1: i32, %arg2: i32) -> (i32, i32) {
    %c0_i32 = arith.constant 0 : i32
    return %arg0, %arg1 : i32, i32
  }
}

module attributes {stable_mosaic.version = 11 : i64} {
  func.func @_attention_kernel(%arg0: i32, %arg1: memref<2xi32, #tpu.memory_space<smem>>, %arg2: memref<8x96xbf16, #tpu.memory_space<vmem>>, %arg3: memref<8x32xbf16, #tpu.memory_space<vmem>>) attributes {dimension_semantics = [#tpu.dimension_semantics<parallel>], iteration_bounds = array<i64: 2>, scalar_prefetch = 1 : i64, scratch_operands = 0 : i64, tpu.core_type = #tpu.core_type<tc>, window_params = [{transform_indices = @transform_0, window_bounds = array<i64: 8, 96>}, {transform_indices = @transform_1, window_bounds = array<i64: 8, 32>}]} {
    %0 = arith.index_cast %arg0 : i32 to index
    %1 = memref.load %arg1[%0] : memref<2xi32, #tpu.memory_space<smem>>
    %c0 = arith.constant 0 : index
    %c0_0 = arith.constant 0 : index
    %2 = vector.load %arg2[%c0, %c0_0] : memref<8x96xbf16, #tpu.memory_space<vmem>>, vector<8x96xbf16>
    %3 = tpu.iota {dimensions = array<i32: 1>} : vector<8x8xi32>
    %4 = vector.broadcast %1 : i32 to vector<8x8xi32>
    %5 = arith.cmpi slt, %3, %4 : vector<8x8xi32>
    %6 = vector.extract_strided_slice %2 {offsets = [0, 0], sizes = [8, 8], strides = [1, 1]} : vector<8x96xbf16> to vector<8x8xbf16>
    %7 = arith.extf %6 : vector<8x8xbf16> to vector<8x8xf32>
    %cst = arith.constant 0.353553385 : f32
    %8 = vector.broadcast %cst : f32 to vector<8x8xf32>
    %9 = arith.mulf %7, %8 : vector<8x8xf32>
    %10 = arith.truncf %9 : vector<8x8xf32> to vector<8x8xbf16>
    %11 = vector.extract_strided_slice %2 {offsets = [0, 32], sizes = [8, 8], strides = [1, 1]} : vector<8x96xbf16> to vector<8x8xbf16>
    %12 = vector.extract_strided_slice %2 {offsets = [0, 64], sizes = [8, 8], strides = [1, 1]} : vector<8x96xbf16> to vector<8x8xbf16>
    %cst_1 = arith.constant dense<0.000000e+00> : vector<8x8xf32>
    %13 = tpu.matmul %10, %11, %cst_1 {dimension_numbers = #tpu.dot_dimension_numbers<[1], [1], [0], [0], [0, 0, 1, 0], [], []>} : vector<8x8xbf16>, vector<8x8xbf16>, vector<8x8xf32> -> vector<8x8xf32>
    %cst_2 = arith.constant -1.000000e+09 : f32
    %14 = vector.broadcast %cst_2 : f32 to vector<8x8xf32>
    %15 = arith.select %5, %13, %14 : vector<8x8xi1>, vector<8x8xf32>
    %cst_3 = arith.constant dense<0xFF800000> : vector<8xf32>
    %16 = vector.multi_reduction <maximumf>, %15, %cst_3 [1] : vector<8x8xf32> to vector<8xf32>
    %17 = vector.shape_cast %16 : vector<8xf32> to vector<8x1xf32>
    %18 = vector.broadcast %17 : vector<8x1xf32> to vector<8x8xf32>
    %19 = arith.subf %15, %18 : vector<8x8xf32>
    %20 = math.exp %19 : vector<8x8xf32>
    %cst_4 = arith.constant dense<0.000000e+00> : vector<8xf32>
    %21 = vector.multi_reduction <add>, %20, %cst_4 [1] : vector<8x8xf32> to vector<8xf32>
    %22 = vector.shape_cast %21 : vector<8xf32> to vector<8x1xf32>
    %23 = tpu.reciprocal %22 {approx = true} : vector<8x1xf32> -> vector<8x1xf32>
    %24 = vector.broadcast %23 : vector<8x1xf32> to vector<8x8xf32>
    %25 = arith.mulf %20, %24 : vector<8x8xf32>
    %26 = arith.truncf %25 : vector<8x8xf32> to vector<8x8xbf16>
    %cst_5 = arith.constant dense<0.000000e+00> : vector<8x8xf32>
    %27 = tpu.matmul %26, %12, %cst_5 {dimension_numbers = #tpu.dot_dimension_numbers<[1], [0], [0], [1], [0, 0, 1, 1], [], []>} : vector<8x8xbf16>, vector<8x8xbf16>, vector<8x8xf32> -> vector<8x8xf32>
    %28 = vector.extract_strided_slice %2 {offsets = [0, 8], sizes = [8, 8], strides = [1, 1]} : vector<8x96xbf16> to vector<8x8xbf16>
    %29 = arith.extf %28 : vector<8x8xbf16> to vector<8x8xf32>
    %cst_6 = arith.constant 0.353553385 : f32
    %30 = vector.broadcast %cst_6 : f32 to vector<8x8xf32>
    %31 = arith.mulf %29, %30 : vector<8x8xf32>
    %32 = arith.truncf %31 : vector<8x8xf32> to vector<8x8xbf16>
    %33 = vector.extract_strided_slice %2 {offsets = [0, 40], sizes = [8, 8], strides = [1, 1]} : vector<8x96xbf16> to vector<8x8xbf16>
    %34 = vector.extract_strided_slice %2 {offsets = [0, 72], sizes = [8, 8], strides = [1, 1]} : vector<8x96xbf16> to vector<8x8xbf16>
    %cst_7 = arith.constant dense<0.000000e+00> : vector<8x8xf32>
    %35 = tpu.matmul %32, %33, %cst_7 {dimension_numbers = #tpu.dot_dimension_numbers<[1], [1], [0], [0], [0, 0, 1, 0], [], []>} : vector<8x8xbf16>, vector<8x8xbf16>, vector<8x8xf32> -> vector<8x8xf32>
    %cst_8 = arith.constant -1.000000e+09 : f32
    %36 = vector.broadcast %cst_8 : f32 to vector<8x8xf32>
    %37 = arith.select %5, %35, %36 : vector<8x8xi1>, vector<8x8xf32>
    %cst_9 = arith.constant dense<0xFF800000> : vector<8xf32>
    %38 = vector.multi_reduction <maximumf>, %37, %cst_9 [1] : vector<8x8xf32> to vector<8xf32>
    %39 = vector.shape_cast %38 : vector<8xf32> to vector<8x1xf32>
    %40 = vector.broadcast %39 : vector<8x1xf32> to vector<8x8xf32>
    %41 = arith.subf %37, %40 : vector<8x8xf32>
    %42 = math.exp %41 : vector<8x8xf32>
    %cst_10 = arith.constant dense<0.000000e+00> : vector<8xf32>
    %43 = vector.multi_reduction <add>, %42, %cst_10 [1] : vector<8x8xf32> to vector<8xf32>
    %44 = vector.shape_cast %43 : vector<8xf32> to vector<8x1xf32>
    %45 = tpu.reciprocal %44 {approx = true} : vector<8x1xf32> -> vector<8x1xf32>
    %46 = vector.broadcast %45 : vector<8x1xf32> to vector<8x8xf32>
    %47 = arith.mulf %42, %46 : vector<8x8xf32>
    %48 = arith.truncf %47 : vector<8x8xf32> to vector<8x8xbf16>
    %cst_11 = arith.constant dense<0.000000e+00> : vector<8x8xf32>
    %49 = tpu.matmul %48, %34, %cst_11 {dimension_numbers = #tpu.dot_dimension_numbers<[1], [0], [0], [1], [0, 0, 1, 1], [], []>} : vector<8x8xbf16>, vector<8x8xbf16>, vector<8x8xf32> -> vector<8x8xf32>
    %50 = vector.extract_strided_slice %2 {offsets = [0, 16], sizes = [8, 8], strides = [1, 1]} : vector<8x96xbf16> to vector<8x8xbf16>
    %51 = arith.extf %50 : vector<8x8xbf16> to vector<8x8xf32>
    %cst_12 = arith.constant 0.353553385 : f32
    %52 = vector.broadcast %cst_12 : f32 to vector<8x8xf32>
    %53 = arith.mulf %51, %52 : vector<8x8xf32>
    %54 = arith.truncf %53 : vector<8x8xf32> to vector<8x8xbf16>
    %55 = vector.extract_strided_slice %2 {offsets = [0, 48], sizes = [8, 8], strides = [1, 1]} : vector<8x96xbf16> to vector<8x8xbf16>
    %56 = vector.extract_strided_slice %2 {offsets = [0, 80], sizes = [8, 8], strides = [1, 1]} : vector<8x96xbf16> to vector<8x8xbf16>
    %cst_13 = arith.constant dense<0.000000e+00> : vector<8x8xf32>
    %57 = tpu.matmul %54, %55, %cst_13 {dimension_numbers = #tpu.dot_dimension_numbers<[1], [1], [0], [0], [0, 0, 1, 0], [], []>} : vector<8x8xbf16>, vector<8x8xbf16>, vector<8x8xf32> -> vector<8x8xf32>
    %cst_14 = arith.constant -1.000000e+09 : f32
    %58 = vector.broadcast %cst_14 : f32 to vector<8x8xf32>
    %59 = arith.select %5, %57, %58 : vector<8x8xi1>, vector<8x8xf32>
    %cst_15 = arith.constant dense<0xFF800000> : vector<8xf32>
    %60 = vector.multi_reduction <maximumf>, %59, %cst_15 [1] : vector<8x8xf32> to vector<8xf32>
    %61 = vector.shape_cast %60 : vector<8xf32> to vector<8x1xf32>
    %62 = vector.broadcast %61 : vector<8x1xf32> to vector<8x8xf32>
    %63 = arith.subf %59, %62 : vector<8x8xf32>
    %64 = math.exp %63 : vector<8x8xf32>
    %cst_16 = arith.constant dense<0.000000e+00> : vector<8xf32>
    %65 = vector.multi_reduction <add>, %64, %cst_16 [1] : vector<8x8xf32> to vector<8xf32>
    %66 = vector.shape_cast %65 : vector<8xf32> to vector<8x1xf32>
    %67 = tpu.reciprocal %66 {approx = true} : vector<8x1xf32> -> vector<8x1xf32>
    %68 = vector.broadcast %67 : vector<8x1xf32> to vector<8x8xf32>
    %69 = arith.mulf %64, %68 : vector<8x8xf32>
    %70 = arith.truncf %69 : vector<8x8xf32> to vector<8x8xbf16>
    %cst_17 = arith.constant dense<0.000000e+00> : vector<8x8xf32>
    %71 = tpu.matmul %70, %56, %cst_17 {dimension_numbers = #tpu.dot_dimension_numbers<[1], [0], [0], [1], [0, 0, 1, 1], [], []>} : vector<8x8xbf16>, vector<8x8xbf16>, vector<8x8xf32> -> vector<8x8xf32>
    %72 = vector.extract_strided_slice %2 {offsets = [0, 24], sizes = [8, 8], strides = [1, 1]} : vector<8x96xbf16> to vector<8x8xbf16>
    %73 = arith.extf %72 : vector<8x8xbf16> to vector<8x8xf32>
    %cst_18 = arith.constant 0.353553385 : f32
    %74 = vector.broadcast %cst_18 : f32 to vector<8x8xf32>
    %75 = arith.mulf %73, %74 : vector<8x8xf32>
    %76 = arith.truncf %75 : vector<8x8xf32> to vector<8x8xbf16>
    %77 = vector.extract_strided_slice %2 {offsets = [0, 56], sizes = [8, 8], strides = [1, 1]} : vector<8x96xbf16> to vector<8x8xbf16>
    %78 = vector.extract_strided_slice %2 {offsets = [0, 88], sizes = [8, 8], strides = [1, 1]} : vector<8x96xbf16> to vector<8x8xbf16>
    %cst_19 = arith.constant dense<0.000000e+00> : vector<8x8xf32>
    %79 = tpu.matmul %76, %77, %cst_19 {dimension_numbers = #tpu.dot_dimension_numbers<[1], [1], [0], [0], [0, 0, 1, 0], [], []>} : vector<8x8xbf16>, vector<8x8xbf16>, vector<8x8xf32> -> vector<8x8xf32>
    %cst_20 = arith.constant -1.000000e+09 : f32
    %80 = vector.broadcast %cst_20 : f32 to vector<8x8xf32>
    %81 = arith.select %5, %79, %80 : vector<8x8xi1>, vector<8x8xf32>
    %cst_21 = arith.constant dense<0xFF800000> : vector<8xf32>
    %82 = vector.multi_reduction <maximumf>, %81, %cst_21 [1] : vector<8x8xf32> to vector<8xf32>
    %83 = vector.shape_cast %82 : vector<8xf32> to vector<8x1xf32>
    %84 = vector.broadcast %83 : vector<8x1xf32> to vector<8x8xf32>
    %85 = arith.subf %81, %84 : vector<8x8xf32>
    %86 = math.exp %85 : vector<8x8xf32>
    %cst_22 = arith.constant dense<0.000000e+00> : vector<8xf32>
    %87 = vector.multi_reduction <add>, %86, %cst_22 [1] : vector<8x8xf32> to vector<8xf32>
    %88 = vector.shape_cast %87 : vector<8xf32> to vector<8x1xf32>
    %89 = tpu.reciprocal %88 {approx = true} : vector<8x1xf32> -> vector<8x1xf32>
    %90 = vector.broadcast %89 : vector<8x1xf32> to vector<8x8xf32>
    %91 = arith.mulf %86, %90 : vector<8x8xf32>
    %92 = arith.truncf %91 : vector<8x8xf32> to vector<8x8xbf16>
    %cst_23 = arith.constant dense<0.000000e+00> : vector<8x8xf32>
    %93 = tpu.matmul %92, %78, %cst_23 {dimension_numbers = #tpu.dot_dimension_numbers<[1], [0], [0], [1], [0, 0, 1, 1], [], []>} : vector<8x8xbf16>, vector<8x8xbf16>, vector<8x8xf32> -> vector<8x8xf32>
    %94 = tpu.concatenate %27, %49, %71, %93 in 1 : vector<8x8xf32>, vector<8x8xf32>, vector<8x8xf32>, vector<8x8xf32> -> vector<8x32xf32>
    %95 = arith.truncf %94 : vector<8x32xf32> to vector<8x32xbf16>
    %c0_24 = arith.constant 0 : index
    %c0_25 = arith.constant 0 : index
    %96 = vector.load %arg3[%c0_24, %c0_25] : memref<8x32xbf16, #tpu.memory_space<vmem>>, vector<8x32xbf16>
    tpu.vector_store %arg3[%c0_24, %c0_25], %95 {strides = array<i32>} : memref<8x32xbf16, #tpu.memory_space<vmem>>, vector<8x32xbf16>,
    return
  }
  func.func @transform_0(%arg0: i32, %arg1: memref<2xi32, #tpu.memory_space<smem>>) -> (i32, i32) {
    %c0_i32 = arith.constant 0 : i32
    %c0_i32_0 = arith.constant 0 : i32
    return %arg0, %c0_i32 : i32, i32
  }
  func.func @transform_1(%arg0: i32, %arg1: memref<2xi32, #tpu.memory_space<smem>>) -> (i32, i32) {
    %c0_i32 = arith.constant 0 : i32
    %c0_i32_0 = arith.constant 0 : i32
    return %arg0, %c0_i32 : i32, i32
  }
}

module attributes {stable_mosaic.version = 11 : i64} {
  func.func @_layernorm_kernel(%arg0: i32, %arg1: memref<1xf32, #tpu.memory_space<smem>>, %arg2: memref<1xf32, #tpu.memory_space<smem>>, %arg3: memref<8x32xf32, #tpu.memory_space<vmem>>, %arg4: memref<8x32xbf16, #tpu.memory_space<vmem>>) attributes {dimension_semantics = [#tpu.dimension_semantics<parallel>], iteration_bounds = array<i64: 2>, scalar_prefetch = 0 : i64, scratch_operands = 0 : i64, tpu.core_type = #tpu.core_type<tc>, window_params = [{transform_indices = @transform_0, window_bounds = array<i64: 1>}, {transform_indices = @transform_1, window_bounds = array<i64: 1>}, {transform_indices = @transform_2, window_bounds = array<i64: 8, 32>}, {transform_indices = @transform_3, window_bounds = array<i64: 8, 32>}]} {
    %c0 = arith.constant 0 : index
    %c0_0 = arith.constant 0 : index
    %0 = vector.load %arg3[%c0, %c0_0] : memref<8x32xf32, #tpu.memory_space<vmem>>, vector<8x32xf32>
    %cst = arith.constant dense<0.000000e+00> : vector<8xf32>
    %1 = vector.multi_reduction <add>, %0, %cst [1] : vector<8x32xf32> to vector<8xf32>
    %2 = vector.shape_cast %1 : vector<8xf32> to vector<8x1xf32>
    %cst_1 = arith.constant 3.125000e-02 : f32
    %3 = vector.broadcast %cst_1 : f32 to vector<8x1xf32>
    %4 = arith.mulf %2, %3 : vector<8x1xf32>
    %5 = vector.broadcast %4 : vector<8x1xf32> to vector<8x32xf32>
    %6 = arith.subf %0, %5 : vector<8x32xf32>
    %7 = arith.mulf %6, %6 : vector<8x32xf32>
    %cst_2 = arith.constant dense<0.000000e+00> : vector<8xf32>
    %8 = vector.multi_reduction <add>, %7, %cst_2 [1] : vector<8x32xf32> to vector<8xf32>
    %9 = vector.shape_cast %8 : vector<8xf32> to vector<8x1xf32>
    %cst_3 = arith.constant 0.0322580636 : f32
    %10 = vector.broadcast %cst_3 : f32 to vector<8x1xf32>
    %11 = arith.mulf %9, %10 : vector<8x1xf32>
    %12 = math.sqrt %11 : vector<8x1xf32>
    %cst_4 = arith.constant 9.99999997E-7 : f32
    %13 = vector.broadcast %cst_4 : f32 to vector<8x1xf32>
    %14 = arith.addf %12, %13 : vector<8x1xf32>
    %15 = tpu.reciprocal %14 : vector<8x1xf32> -> vector<8x1xf32>
    %c0_5 = arith.constant 0 : index
    %16 = memref.load %arg1[%c0_5] : memref<1xf32, #tpu.memory_space<smem>>
    %17 = vector.broadcast %16 : f32 to vector<8x1xf32>
    %18 = arith.mulf %17, %15 : vector<8x1xf32>
    %19 = vector.broadcast %18 : vector<8x1xf32> to vector<8x32xf32>
    %20 = arith.mulf %6, %19 : vector<8x32xf32>
    %c0_6 = arith.constant 0 : index
    %21 = memref.load %arg2[%c0_6] : memref<1xf32, #tpu.memory_space<smem>>
    %22 = vector.broadcast %21 : f32 to vector<8x32xf32>
    %23 = arith.addf %20, %22 : vector<8x32xf32>
    %24 = arith.truncf %23 : vector<8x32xf32> to vector<8x32xbf16>
    %c0_7 = arith.constant 0 : index
    %c0_8 = arith.constant 0 : index
    %25 = vector.load %arg4[%c0_7, %c0_8] : memref<8x32xbf16, #tpu.memory_space<vmem>>, vector<8x32xbf16>
    tpu.vector_store %arg4[%c0_7, %c0_8], %24 {strides = array<i32>} : memref<8x32xbf16, #tpu.memory_space<vmem>>, vector<8x32xbf16>,
    return
  }
  func.func @transform_0(%arg0: i32) -> i32 {
    %c0_i32 = arith.constant 0 : i32
    %c0_i32_0 = arith.constant 0 : i32
    return %c0_i32 : i32
  }
  func.func @transform_1(%arg0: i32) -> i32 {
    %c0_i32 = arith.constant 0 : i32
    %c0_i32_0 = arith.constant 0 : i32
    return %c0_i32 : i32
  }
  func.func @transform_2(%arg0: i32) -> (i32, i32) {
    %c0_i32 = arith.constant 0 : i32
    %c0_i32_0 = arith.constant 0 : i32
    return %arg0, %c0_i32 : i32, i32
  }
  func.func @transform_3(%arg0: i32) -> (i32, i32) {
    %c0_i32 = arith.constant 0 : i32
    %c0_i32_0 = arith.constant 0 : i32
    return %arg0, %c0_i32 : i32, i32
  }
}

module attributes {stable_mosaic.version = 11 : i64} {
  func.func @_linear_kernel(%arg0: i32, %arg1: i32, %arg2: i32, %arg3: memref<8x32xbf16, #tpu.memory_space<vmem>>, %arg4: memref<32x32xbf16, #tpu.memory_space<vmem>>, %arg5: memref<1x32xf32, #tpu.memory_space<vmem>>, %arg6: memref<8x32xf32, #tpu.memory_space<vmem>>, %arg7: memref<8x32xf32, #tpu.memory_space<vmem>>, %arg8: memref<8x32xf32, #tpu.memory_space<vmem>>) attributes {dimension_semantics = [#tpu.dimension_semantics<parallel>, #tpu.dimension_semantics<parallel>, #tpu.dimension_semantics<arbitrary>], iteration_bounds = array<i64: 2, 1, 1>, scalar_prefetch = 0 : i64, scratch_operands = 1 : i64, tpu.core_type = #tpu.core_type<tc>, window_params = [{transform_indices = @transform_0, window_bounds = array<i64: 8, 32>}, {transform_indices = @transform_1, window_bounds = array<i64: 32, 32>}, {transform_indices = @transform_2, window_bounds = array<i64: 1, 32>}, {transform_indices = @transform_3, window_bounds = array<i64: 8, 32>}, {transform_indices = @transform_4, window_bounds = array<i64: 8, 32>}]} {
    %c0_i32 = arith.constant 0 : i32
    %0 = arith.cmpi eq, %arg2, %c0_i32 : i32
    %1 = arith.extui %0 : i1 to i32
    %c0_i32_0 = arith.constant 0 : i32
    %2 = arith.cmpi ne, %1, %c0_i32_0 : i32
    scf.if %2 {
      %cst_10 = arith.constant 0.000000e+00 : f32
      %12 = vector.broadcast %cst_10 : f32 to vector<8x32xf32>
      %c0_11 = arith.constant 0 : index
      %c0_12 = arith.constant 0 : index
      %13 = vector.load %arg8[%c0_11, %c0_12] : memref<8x32xf32, #tpu.memory_space<vmem>>, vector<8x32xf32>
      tpu.vector_store %arg8[%c0_11, %c0_12], %12 {strides = array<i32>} : memref<8x32xf32, #tpu.memory_space<vmem>>, vector<8x32xf32>,
    } else {
    }
    %c0 = arith.constant 0 : index
    %c0_1 = arith.constant 0 : index
    %3 = vector.load %arg8[%c0, %c0_1] : memref<8x32xf32, #tpu.memory_space<vmem>>, vector<8x32xf32>
    %c0_2 = arith.constant 0 : index
    %c0_3 = arith.constant 0 : index
    %4 = vector.load %arg3[%c0_2, %c0_3] : memref<8x32xbf16, #tpu.memory_space<vmem>>, vector<8x32xbf16>
    %c0_4 = arith.constant 0 : index
    %c0_5 = arith.constant 0 : index
    %5 = vector.load %arg4[%c0_4, %c0_5] : memref<32x32xbf16, #tpu.memory_space<vmem>>, vector<32x32xbf16>
    %cst = arith.constant dense<0.000000e+00> : vector<8x32xf32>
    %6 = tpu.matmul %4, %5, %cst {dimension_numbers = #tpu.dot_dimension_numbers<[1], [0], [0], [1], [0, 0, 1, 1], [], []>} : vector<8x32xbf16>, vector<32x32xbf16>, vector<8x32xf32> -> vector<8x32xf32>
    %7 = arith.addf %3, %6 : vector<8x32xf32>
    %c0_6 = arith.constant 0 : index
    %c0_7 = arith.constant 0 : index
    %8 = vector.load %arg8[%c0_6, %c0_7] : memref<8x32xf32, #tpu.memory_space<vmem>>, vector<8x32xf32>
    tpu.vector_store %arg8[%c0_6, %c0_7], %7 {strides = array<i32>} : memref<8x32xf32, #tpu.memory_space<vmem>>, vector<8x32xf32>,
    %c0_i32_8 = arith.constant 0 : i32
    %9 = arith.cmpi eq, %arg2, %c0_i32_8 : i32
    %10 = arith.extui %9 : i1 to i32
    %c0_i32_9 = arith.constant 0 : i32
    %11 = arith.cmpi ne, %10, %c0_i32_9 : i32
    scf.if %11 {
      %c0_10 = arith.constant 0 : index
      %c0_11 = arith.constant 0 : index
      %12 = vector.load %arg8[%c0_10, %c0_11] : memref<8x32xf32, #tpu.memory_space<vmem>>, vector<8x32xf32>
      %c0_12 = arith.constant 0 : index
      %c0_13 = arith.constant 0 : index
      %13 = vector.load %arg5[%c0_12, %c0_13] : memref<1x32xf32, #tpu.memory_space<vmem>>, vector<1x32xf32>
      %14 = vector.broadcast %13 : vector<1x32xf32> to vector<8x32xf32>
      %15 = arith.addf %12, %14 : vector<8x32xf32>
      %c0_14 = arith.constant 0 : index
      %c0_15 = arith.constant 0 : index
      %16 = vector.load %arg6[%c0_14, %c0_15] : memref<8x32xf32, #tpu.memory_space<vmem>>, vector<8x32xf32>
      %17 = arith.addf %15, %16 : vector<8x32xf32>
      %c0_16 = arith.constant 0 : index
      %c0_17 = arith.constant 0 : index
      %18 = vector.load %arg7[%c0_16, %c0_17] : memref<8x32xf32, #tpu.memory_space<vmem>>, vector<8x32xf32>
      tpu.vector_store %arg7[%c0_16, %c0_17], %17 {strides = array<i32>} : memref<8x32xf32, #tpu.memory_space<vmem>>, vector<8x32xf32>,
    } else {
    }
    return
  }
  func.func @transform_0(%arg0: i32, %arg1: i32, %arg2: i32) -> (i32, i32) {
    %c0_i32 = arith.constant 0 : i32
    return %arg0, %arg2 : i32, i32
  }
  func.func @transform_1(%arg0: i32, %arg1: i32, %arg2: i32) -> (i32, i32) {
    %c0_i32 = arith.constant 0 : i32
    return %arg2, %arg1 : i32, i32
  }
  func.func @transform_2(%arg0: i32, %arg1: i32, %arg2: i32) -> (i32, i32) {
    %c0_i32 = arith.constant 0 : i32
    %c0_i32_0 = arith.constant 0 : i32
    return %c0_i32, %arg1 : i32, i32
  }
  func.func @transform_3(%arg0: i32, %arg1: i32, %arg2: i32) -> (i32, i32) {
    %c0_i32 = arith.constant 0 : i32
    return %arg0, %arg1 : i32, i32
  }
  func.func @transform_4(%arg0: i32, %arg1: i32, %arg2: i32) -> (i32, i32) {
    %c0_i32 = arith.constant 0 : i32
    return %arg0, %arg1 : i32, i32
  }
}

module attributes {stable_mosaic.version = 11 : i64} {
  func.func @_linear_kernel(%arg0: i32, %arg1: i32, %arg2: i32, %arg3: memref<8x32xbf16, #tpu.memory_space<vmem>>, %arg4: memref<32x64xbf16, #tpu.memory_space<vmem>>, %arg5: memref<1x64xf32, #tpu.memory_space<vmem>>, %arg6: memref<8x64xbf16, #tpu.memory_space<vmem>>, %arg7: memref<8x64xf32, #tpu.memory_space<vmem>>) attributes {dimension_semantics = [#tpu.dimension_semantics<parallel>, #tpu.dimension_semantics<parallel>, #tpu.dimension_semantics<arbitrary>], iteration_bounds = array<i64: 2, 1, 1>, scalar_prefetch = 0 : i64, scratch_operands = 1 : i64, tpu.core_type = #tpu.core_type<tc>, window_params = [{transform_indices = @transform_0, window_bounds = array<i64: 8, 32>}, {transform_indices = @transform_1, window_bounds = array<i64: 32, 64>}, {transform_indices = @transform_2, window_bounds = array<i64: 1, 64>}, {transform_indices = @transform_3, window_bounds = array<i64: 8, 64>}]} {
    %c0_i32 = arith.constant 0 : i32
    %0 = arith.cmpi eq, %arg2, %c0_i32 : i32
    %1 = arith.extui %0 : i1 to i32
    %c0_i32_0 = arith.constant 0 : i32
    %2 = arith.cmpi ne, %1, %c0_i32_0 : i32
    scf.if %2 {
      %cst_10 = arith.constant 0.000000e+00 : f32
      %12 = vector.broadcast %cst_10 : f32 to vector<8x64xf32>
      %c0_11 = arith.constant 0 : index
      %c0_12 = arith.constant 0 : index
      %13 = vector.load %arg7[%c0_11, %c0_12] : memref<8x64xf32, #tpu.memory_space<vmem>>, vector<8x64xf32>
      tpu.vector_store %arg7[%c0_11, %c0_12], %12 {strides = array<i32>} : memref<8x64xf32, #tpu.memory_space<vmem>>, vector<8x64xf32>,
    } else {
    }
    %c0 = arith.constant 0 : index
    %c0_1 = arith.constant 0 : index
    %3 = vector.load %arg7[%c0, %c0_1] : memref<8x64xf32, #tpu.memory_space<vmem>>, vector<8x64xf32>
    %c0_2 = arith.constant 0 : index
    %c0_3 = arith.constant 0 : index
    %4 = vector.load %arg3[%c0_2, %c0_3] : memref<8x32xbf16, #tpu.memory_space<vmem>>, vector<8x32xbf16>
    %c0_4 = arith.constant 0 : index
    %c0_5 = arith.constant 0 : index
    %5 = vector.load %arg4[%c0_4, %c0_5] : memref<32x64xbf16, #tpu.memory_space<vmem>>, vector<32x64xbf16>
    %cst = arith.constant dense<0.000000e+00> : vector<8x64xf32>
    %6 = tpu.matmul %4, %5, %cst {dimension_numbers = #tpu.dot_dimension_numbers<[1], [0], [0], [1], [0, 0, 1, 1], [], []>} : vector<8x32xbf16>, vector<32x64xbf16>, vector<8x64xf32> -> vector<8x64xf32>
    %7 = arith.addf %3, %6 : vector<8x64xf32>
    %c0_6 = arith.constant 0 : index
    %c0_7 = arith.constant 0 : index
    %8 = vector.load %arg7[%c0_6, %c0_7] : memref<8x64xf32, #tpu.memory_space<vmem>>, vector<8x64xf32>
    tpu.vector_store %arg7[%c0_6, %c0_7], %7 {strides = array<i32>} : memref<8x64xf32, #tpu.memory_space<vmem>>, vector<8x64xf32>,
    %c0_i32_8 = arith.constant 0 : i32
    %9 = arith.cmpi eq, %arg2, %c0_i32_8 : i32
    %10 = arith.extui %9 : i1 to i32
    %c0_i32_9 = arith.constant 0 : i32
    %11 = arith.cmpi ne, %10, %c0_i32_9 : i32
    scf.if %11 {
      %c0_10 = arith.constant 0 : index
      %c0_11 = arith.constant 0 : index
      %12 = vector.load %arg7[%c0_10, %c0_11] : memref<8x64xf32, #tpu.memory_space<vmem>>, vector<8x64xf32>
      %c0_12 = arith.constant 0 : index
      %c0_13 = arith.constant 0 : index
      %13 = vector.load %arg5[%c0_12, %c0_13] : memref<1x64xf32, #tpu.memory_space<vmem>>, vector<1x64xf32>
      %14 = vector.broadcast %13 : vector<1x64xf32> to vector<8x64xf32>
      %15 = arith.addf %12, %14 : vector<8x64xf32>
      %cst_14 = arith.constant 0.000000e+00 : f32
      %16 = vector.broadcast %cst_14 : f32 to vector<8x64xf32>
      %17 = arith.maximumf %15, %16 : vector<8x64xf32>
      %18 = arith.truncf %17 : vector<8x64xf32> to vector<8x64xbf16>
      %c0_15 = arith.constant 0 : index
      %c0_16 = arith.constant 0 : index
      %19 = vector.load %arg6[%c0_15, %c0_16] : memref<8x64xbf16, #tpu.memory_space<vmem>>, vector<8x64xbf16>
      tpu.vector_store %arg6[%c0_15, %c0_16], %18 {strides = array<i32>} : memref<8x64xbf16, #tpu.memory_space<vmem>>, vector<8x64xbf16>,
    } else {
    }
    return
  }
  func.func @transform_0(%arg0: i32, %arg1: i32, %arg2: i32) -> (i32, i32) {
    %c0_i32 = arith.constant 0 : i32
    return %arg0, %arg2 : i32, i32
  }
  func.func @transform_1(%arg0: i32, %arg1: i32, %arg2: i32) -> (i32, i32) {
    %c0_i32 = arith.constant 0 : i32
    return %arg2, %arg1 : i32, i32
  }
  func.func @transform_2(%arg0: i32, %arg1: i32, %arg2: i32) -> (i32, i32) {
    %c0_i32 = arith.constant 0 : i32
    %c0_i32_0 = arith.constant 0 : i32
    return %c0_i32, %arg1 : i32, i32
  }
  func.func @transform_3(%arg0: i32, %arg1: i32, %arg2: i32) -> (i32, i32) {
    %c0_i32 = arith.constant 0 : i32
    return %arg0, %arg1 : i32, i32
  }
}

module attributes {stable_mosaic.version = 11 : i64} {
  func.func @_linear_kernel(%arg0: i32, %arg1: i32, %arg2: i32, %arg3: memref<8x64xbf16, #tpu.memory_space<vmem>>, %arg4: memref<64x32xbf16, #tpu.memory_space<vmem>>, %arg5: memref<1x32xf32, #tpu.memory_space<vmem>>, %arg6: memref<8x32xf32, #tpu.memory_space<vmem>>, %arg7: memref<8x32xf32, #tpu.memory_space<vmem>>, %arg8: memref<8x32xf32, #tpu.memory_space<vmem>>) attributes {dimension_semantics = [#tpu.dimension_semantics<parallel>, #tpu.dimension_semantics<parallel>, #tpu.dimension_semantics<arbitrary>], iteration_bounds = array<i64: 2, 1, 1>, scalar_prefetch = 0 : i64, scratch_operands = 1 : i64, tpu.core_type = #tpu.core_type<tc>, window_params = [{transform_indices = @transform_0, window_bounds = array<i64: 8, 64>}, {transform_indices = @transform_1, window_bounds = array<i64: 64, 32>}, {transform_indices = @transform_2, window_bounds = array<i64: 1, 32>}, {transform_indices = @transform_3, window_bounds = array<i64: 8, 32>}, {transform_indices = @transform_4, window_bounds = array<i64: 8, 32>}]} {
    %c0_i32 = arith.constant 0 : i32
    %0 = arith.cmpi eq, %arg2, %c0_i32 : i32
    %1 = arith.extui %0 : i1 to i32
    %c0_i32_0 = arith.constant 0 : i32
    %2 = arith.cmpi ne, %1, %c0_i32_0 : i32
    scf.if %2 {
      %cst_10 = arith.constant 0.000000e+00 : f32
      %12 = vector.broadcast %cst_10 : f32 to vector<8x32xf32>
      %c0_11 = arith.constant 0 : index
      %c0_12 = arith.constant 0 : index
      %13 = vector.load %arg8[%c0_11, %c0_12] : memref<8x32xf32, #tpu.memory_space<vmem>>, vector<8x32xf32>
      tpu.vector_store %arg8[%c0_11, %c0_12], %12 {strides = array<i32>} : memref<8x32xf32, #tpu.memory_space<vmem>>, vector<8x32xf32>,
    } else {
    }
    %c0 = arith.constant 0 : index
    %c0_1 = arith.constant 0 : index
    %3 = vector.load %arg8[%c0, %c0_1] : memref<8x32xf32, #tpu.memory_space<vmem>>, vector<8x32xf32>
    %c0_2 = arith.constant 0 : index
    %c0_3 = arith.constant 0 : index
    %4 = vector.load %arg3[%c0_2, %c0_3] : memref<8x64xbf16, #tpu.memory_space<vmem>>, vector<8x64xbf16>
    %c0_4 = arith.constant 0 : index
    %c0_5 = arith.constant 0 : index
    %5 = vector.load %arg4[%c0_4, %c0_5] : memref<64x32xbf16, #tpu.memory_space<vmem>>, vector<64x32xbf16>
    %cst = arith.constant dense<0.000000e+00> : vector<8x32xf32>
    %6 = tpu.matmul %4, %5, %cst {dimension_numbers = #tpu.dot_dimension_numbers<[1], [0], [0], [1], [0, 0, 1, 1], [], []>} : vector<8x64xbf16>, vector<64x32xbf16>, vector<8x32xf32> -> vector<8x32xf32>
    %7 = arith.addf %3, %6 : vector<8x32xf32>
    %c0_6 = arith.constant 0 : index
    %c0_7 = arith.constant 0 : index
    %8 = vector.load %arg8[%c0_6, %c0_7] : memref<8x32xf32, #tpu.memory_space<vmem>>, vector<8x32xf32>
    tpu.vector_store %arg8[%c0_6, %c0_7], %7 {strides = array<i32>} : memref<8x32xf32, #tpu.memory_space<vmem>>, vector<8x32xf32>,
    %c0_i32_8 = arith.constant 0 : i32
    %9 = arith.cmpi eq, %arg2, %c0_i32_8 : i32
    %10 = arith.extui %9 : i1 to i32
    %c0_i32_9 = arith.constant 0 : i32
    %11 = arith.cmpi ne, %10, %c0_i32_9 : i32
    scf.if %11 {
      %c0_10 = arith.constant 0 : index
      %c0_11 = arith.constant 0 : index
      %12 = vector.load %arg8[%c0_10, %c0_11] : memref<8x32xf32, #tpu.memory_space<vmem>>, vector<8x32xf32>
      %c0_12 = arith.constant 0 : index
      %c0_13 = arith.constant 0 : index
      %13 = vector.load %arg5[%c0_12, %c0_13] : memref<1x32xf32, #tpu.memory_space<vmem>>, vector<1x32xf32>
      %14 = vector.broadcast %13 : vector<1x32xf32> to vector<8x32xf32>
      %15 = arith.addf %12, %14 : vector<8x32xf32>
      %c0_14 = arith.constant 0 : index
      %c0_15 = arith.constant 0 : index
      %16 = vector.load %arg6[%c0_14, %c0_15] : memref<8x32xf32, #tpu.memory_space<vmem>>, vector<8x32xf32>
      %17 = arith.addf %15, %16 : vector<8x32xf32>
      %c0_16 = arith.constant 0 : index
      %c0_17 = arith.constant 0 : index
      %18 = vector.load %arg7[%c0_16, %c0_17] : memref<8x32xf32, #tpu.memory_space<vmem>>, vector<8x32xf32>
      tpu.vector_store %arg7[%c0_16, %c0_17], %17 {strides = array<i32>} : memref<8x32xf32, #tpu.memory_space<vmem>>, vector<8x32xf32>,
    } else {
    }
    return
  }
  func.func @transform_0(%arg0: i32, %arg1: i32, %arg2: i32) -> (i32, i32) {
    %c0_i32 = arith.constant 0 : i32
    return %arg0, %arg2 : i32, i32
  }
  func.func @transform_1(%arg0: i32, %arg1: i32, %arg2: i32) -> (i32, i32) {
    %c0_i32 = arith.constant 0 : i32
    return %arg2, %arg1 : i32, i32
  }
  func.func @transform_2(%arg0: i32, %arg1: i32, %arg2: i32) -> (i32, i32) {
    %c0_i32 = arith.constant 0 : i32
    %c0_i32_0 = arith.constant 0 : i32
    return %c0_i32, %arg1 : i32, i32
  }
  func.func @transform_3(%arg0: i32, %arg1: i32, %arg2: i32) -> (i32, i32) {
    %c0_i32 = arith.constant 0 : i32
    return %arg0, %arg1 : i32, i32
  }
  func.func @transform_4(%arg0: i32, %arg1: i32, %arg2: i32) -> (i32, i32) {
    %c0_i32 = arith.constant 0 : i32
    return %arg0, %arg1 : i32, i32
  }
}

</mosaic_0001>

<bundles_post_ra>
// kernel: encoder_block.7
= control target key start
LH: loop header
LB: loop body
LE: loop exit
PB: predicated region body
PF: predicated region fallthrough
CT: control target
= control target key end

     0   :  { %s307_s16 = smov 0   ;;  %s328_s0 = inlined_call_operand.<no memory space> [shape: f32[1], index: 0, kind: input, shape index: {}]   ;;  %s329_s1 = inlined_call_operand.<no memory space> [shape: f32[1], index: 1, kind: input, shape index: {}]   ;;  %s330_s2 = inlined_call_operand.vmem [shape: f32[16,32], index: 2, kind: input, shape index: {}]   ;;  %s331_s3 = inlined_call_operand.vmem [shape: bf16[16,32], index: 3, kind: output, shape index: {}]  }
   0x1   :  { %8 = sst [smem:[#allocation2]] %s328_s0 }
   0x2   :  { %9 = sst [smem:[#allocation3]] %s329_s1 }
   0x3 LB: > { %s252_s17 = sadd.s32 4294967295, %s279_s16   ;;  %p256_p0 = scmp.ge.s32.totalorder %s279_s16, 1  ;;  %s279_s16 = sphi %s307_s16, %s15_s16  }
   0x4   : > { %p138_p1 = scmp.lt.s32.totalorder %s279_s16, 3 }
   0x6   : > { %p139_p2 = pnand %p256_p0, %p138_p1 }
   0x7   : > { %p160_p3 = scmp.lt.s32.totalorder (!%p139_p2), %s252_s17, 1  ;;  %vm169_vm0 = vcmask (!%p139_p2), 261120   ;;  %s189_s20 = sld [smem:[#allocation2]] (!%p139_p2)  ;;  %vm197_vm3 = vcmask (!%p139_p2), 257024  }
   0x8   : > { %142 = sbr.rel (%p139_p2) target bundleno = 350 (0x15e), region = 32  ;;  %s193_s21 = sld [smem:[#allocation3]] (!%p139_p2) }
   0xd   : > { %v190_v15 = vstv (!%p139_p2), %s189_s20 }
   0xe   : > { %v194_v18 = vstv (!%p139_p2), %s193_s21 }
   0xf   : > { %s333_s17 = smov (!%p160_p3, %s252_s17), 1 }
  0x10   : > { %s257_s0 = sshll.u32 %s333_s17, 3  ;;  %s258_s22 = sshll.u32 %s333_s17, 2 }
  0x11   : > { %s163_s19 = scalar_lea.vmem %s330_s2, %s257_s0  ;;  %s167_s25 = scalar_lea.vmem %s331_s3, %s258_s22 }
  0x12   : > { %v168_v0 = vld [vmem:[%s163_s19] sm:$0xff] }
  0x13   : > { %v170_v1 = vsel %vm169_vm0, %v168_v0, 0.0 }
  0x14   : > { %171 = vadd.xlane.f32.xlu0 %v170_v1 }
  0xa1   : > { %v172_v2 = vpop.xlane.xlu0 %171 }
  0xa2   : > { %v173_v3 = vmul.f32 0.03125, %v172_v2 }
  0xa4   : > { %v174_v4 = vsub.f32 %v168_v0, %v173_v3 }
  0xa6   : > { %v175_v5 = vmul.f32 %v174_v4, %v174_v4 }
  0xa8   : > { %v176_v6 = vsel %vm169_vm0, %v175_v5, 0.0 }
  0xa9   : > { %177 = vadd.xlane.f32.xlu0 %v176_v6 }
 0x136   : > { %v178_v7 = vpop.xlane.xlu0 %177 }
 0x137   : > { %v179_v8 = vmul.f32 0.032258064, %v178_v7 }
 0x139   : > { %269 = vrsqrt.f32 %v179_v8  ;;  %vm182_vm1 = vcmp.eq.f32.partialorder %v179_v8, inf  ;;  %v185_v11 = vand.u32 2147483648, %v179_v8  ;;  %vm184_vm2 = vcmp.eq.f32.partialorder %v179_v8, 0.0 }
 0x143   : > { %v270_v9 = vpop.eup %269 }
 0x144   : > { %v181_v10 = vmul.f32 %v270_v9, %v179_v8 }
 0x146   : > { %v183_v12 = vsel %vm182_vm1, %v179_v8, %v181_v10 }
 0x147   : > { %v186_v13 = vsel %vm184_vm2, %v185_v11, %v183_v12 }
 0x148   : > { %v187_v14 = vadd.f32 1e-06, %v186_v13 }
 0x14a   : > { %271 = vrcp.f32 %v187_v14 }
 0x154   : > { %v272_v16 = vpop.eup %271 }
 0x155   : > { %v191_v17 = vmul.f32 %v272_v16, %v190_v15 }
 0x157   : > { %v192_v19 = vmul.f32 %v191_v17, %v174_v4 }
 0x159   : > { %v195_v20 = vadd.f32 %v194_v18, %v192_v19 }
 0x15b   : > { %v196_v21 = vpack.c.bf16 %v195_v20, %v195_v20 }
 0x15d   : > { %198 = vst.msk [vmem:[%s167_s25] sm:$0xf] %vm197_vm3, %v196_v21 }
 0x15e PF: > { %s15_s16 = sadd.s32 1, %s279_s16  }
 0x15f   : > { %p12_p4 = scmp.ge.s32.totalorder %s15_s16, 4  }
 0x161   :  { %14 = sbr.rel (!%p12_p4) target bundleno = 3 (0x3), region = 62 }

// kernel: encoder_block.8
= control target key start
LH: loop header
LB: loop body
LE: loop exit
PB: predicated region body
PF: predicated region fallthrough
CT: control target
= control target key end

     0   :  { %s546_s12 = smov 0   ;;  %s548_s13 = smov 0   ;;  %s590_s0 = inlined_call_operand.vmem [shape: bf16[16,32], index: 0, kind: input, shape index: {}]   ;;  %s591_s1 = inlined_call_operand.vmem [shape: bf16[32,96], index: 1, kind: input, shape index: {}]   ;;  %s592_s2 = inlined_call_operand.vmem [shape: f32[1,96], index: 2, kind: input, shape index: {}]   ;;  %s593_s3 = inlined_call_operand.vmem [shape: bf16[16,96], index: 3, kind: output, shape index: {}]  }
   0x1   :  { %s550_s14 = smov 0  }
   0x2 LB: > { %s32_s15 = sadd.s32 1, %s518_s13  ;;  %p452_p0 = scmp.ge.s32.totalorder %s522_s14, 1  ;;  %s522_s14 = sphi %s550_s14, %s13_s14   ;;  %s518_s13 = sphi %s548_s13, %s595_s13   ;;  %s514_s12 = sphi %s546_s12, %s594_s12  }
   0x3   : > { %p34_p1 = scmp.ge.s32.totalorder %s32_s15, 2  ;;  %p186_p2 = scmp.lt.s32.totalorder %s522_s14, 3 }
   0x5   : > { %s597_s15 = smov (%p34_p1, %s32_s15), 0  ;;  %p187_p3 = pnand %p452_p0, %p186_p2 }
   0x6   : > { %vm256_vm0 = vcmask (!%p187_p3), 785408   ;;  %v524_v0 = vmov (!%p187_p3), 0.0   ;;  %v498_v1 = vld [vmem:[%s591_s1] sm:$0xff] (!%p187_p3)   ;;  %vm525_vm1 = vmmov (!%p187_p3), 0   ;;  %p225_p4 = scmp.lt.s32.totalorder (!%p187_p3), %s514_s12, 1  ;;  %v499_v2 = vld [vmem:[%s591_s1 + $0x8] sm:$0xff] (!%p187_p3)  }
   0x7   : > { %190 = sbr.rel (%p187_p3) target bundleno = 245 (0xf5), region = 32  ;;  %257 = vst.msk [vmem:[#allocation2] sm:$0xff] (!%p187_p3), %vm256_vm0, %v524_v0  ;;  %464 = vmatprep.subr.bf16.mxu0 (!%p187_p3), %v524_v0  ;;  %468 = vmatprep.mubr.msk.bf16.mxu0 (!%p187_p3), %vm525_vm1, %v524_v0  ;;  %vm276_vm2 = vcmask (!%p187_p3), 261120   ;;  %v458_v10 = vld [vmem:[%s592_s2] ss:$0 sm:$0xff] (!%p187_p3)  ;;  %vm336_vm3 = vcmask (!%p187_p3), 781312  }
   0x8   : > { %465 = vmatpush3.bf16.msra.mxu0 (!%p187_p3), %v498_v1 }
   0x9   : > { %466 = vmatprep.subr.bf16.mxu0 (!%p187_p3), %v524_v0 }
   0xc   : > { %467 = vmatpush3.bf16.msra.mxu0 (!%p187_p3), %v499_v2 }
   0xe   : > { %s599_s12 = smov (!%p225_p4, %s514_s12), 1  ;;  %v258_v4 = vld [vmem:[#allocation2] sm:$0xff] }
   0xf   : > { %s453_s20 = sshll.u32 %s599_s12, 2 }
  0x10   : > { %s231_s23 = scalar_lea.vmem %s590_s0, %s453_s20  ;;  %s250_s28 = scalar_lea.vmem %s593_s3, %s453_s20 }
  0x11   : > { %v259_v3 = vld [vmem:[%s231_s23] sm:$0xf] }
  0x12   : > { %469 = vmatmul.mubr.msk.bf16.vlgmr.msra.gmra.mrb[0].mxu0 %vm276_vm2, %v259_v3 }
  0xe5   : > { %v314_v5 = vpop.f32.mrb[0].mxu0 }
  0xe6   : > { %v320_v6 = vadd.f32 %v314_v5, %v258_v4  ;;  %v470_v7 = vpop.f32.mrb[1].mxu0 }
  0xe7   : > { %v317_v8 = vpop.f32.mrb[2].mxu0 }
  0xe8   : > { %322 = vst.msk [vmem:[#allocation2] sm:$0xff] %vm256_vm0, %v320_v6  ;;  %v471_v9 = vpop.f32.mrb[3].mxu0 }
  0xef   : > { %v326_v11 = vld [vmem:[#allocation2] sm:$0xff] }
  0xf0   : > { %v334_v12 = vadd.f32 %v458_v10, %v326_v11 }
  0xf2   : > { %v335_v13 = vpack.c.bf16 %v334_v12, %v334_v12 }
  0xf4   : > { %337 = vst.msk [vmem:[%s250_s28] sm:$0xf] %vm336_vm3, %v335_v13 }
  0xf5 PF: > { %s13_s14 = sadd.s32 1, %s522_s14   ;;  %s594_s12 = smov %s518_s13 }
  0xf6   : > { %p10_p5 = scmp.ge.s32.totalorder %s13_s14, 4   ;;  %s595_s13 = smov %s597_s15 }
  0xf8   :  { %12 = sbr.rel (!%p10_p5) target bundleno = 2 (0x2), region = 76 }

// kernel: encoder_block.9
= control target key start
LH: loop header
LB: loop body
LE: loop exit
PB: predicated region body
PF: predicated region fallthrough
CT: control target
= control target key end

     0   :  { %s934_s0 = inlined_call_operand.vmem [shape: s32[2], index: 0, kind: input, shape index: {}]   ;;  %s935_s1 = inlined_call_operand.vmem [shape: bf16[16,96], index: 1, kind: input, shape index: {}]   ;;  %s936_s2 = inlined_call_operand.vmem [shape: bf16[16,32], index: 2, kind: output, shape index: {}]  }
   0x1   :  { %s7_s11 = sshll.u32 %s934_s0, 4  ;;  %s8_s11 = int_to_ptr.vmem [resolvable:$true] %s7_s11 }
   0x2   :  { %s774_s12 = scalar_lea.vmem %s8_s11, 16  ;;  %p779_p1 = scmp.lt.s32.totalorder %s8_s11, %s8_s11 }
   0x3   :  { %p775_p0 = scmp.ne.s32.totalorder %s8_s11, %s774_s12  ;;  %p780_p2 = scmp.lt.s32.totalorder %s774_s12, %s774_s12 }
   0x5   :  { %p781_p3 = por %p780_p2, %p779_p1 }
   0x7   :  { %p782_p4 = pnand %p781_p3, %p775_p0 }
   0x9   :  { %785 = shalt.err (!%p782_p4)  }
   0xa   :  { %s796_s13 = smov [#allocation3]  }
   0xb   :  { %10 = dma.vmem_to_smem %s8_s11, 16, %s796_s13, [#allocation2] }
   0xc   :  { %790 = dma.done.wait [#allocation2], 16 }
   0xd   :  { %791 = vsyncadd [#allocation2], 4294967280 }
   0xe   :  { %12 = sfence }
   0xf   :  { %s831_s14 = smov 0  }
  0x10 LB: > { %s837_s0 = sadd.s32 4294967295, %s794_s14   ;;  %p654_p5 = scmp.ge.s32.totalorder %s794_s14, 1  ;;  %s794_s14 = sphi %s831_s14, %s18_s14  }
  0x11   : > { %p93_p6 = scmp.lt.s32.totalorder %s794_s14, 3 }
  0x13   : > { %p94_p7 = pnand %p654_p5, %p93_p6 }
  0x14   : > { %p111_p8 = scmp.lt.s32.totalorder (!%p94_p7), %s837_s0, 1  ;;  %v797_v0 = vmov (!%p94_p7), 0.0   ;;  %vm798_vm0 = vmmov (!%p94_p7), 0   ;;  %s799_s20 = smov (!%p94_p7), 96   ;;  %vm134_vm1 = vcmask (!%p94_p7), 64512   ;;  %v122_v8 = vlaneseq (!%p94_p7) }
  0x15   : > { %97 = sbr.rel (%p94_p7) target bundleno = 1616 (0x650), region = 24  ;;  %684 = vmatprep.subr.bf16.mxu0 (!%p94_p7), %v797_v0  ;;  %686 = vmatprep.mubr.msk.bf16.mxu0 (!%p94_p7), %vm798_vm0, %v797_v0  ;;  %s800_s21 = smov (!%p94_p7), 64   ;;  %vm199_vm3 = vcmask (!%p94_p7), 1043456   ;;  %vm590_vm4 = vcmask (!%p94_p7), 130048   ;;  %vm592_vm5 = vcmask (!%p94_p7), 195584   ;;  %vm595_vm6 = vcmask (!%p94_p7), 257024  }
  0x16   : > { %690 = vmatprep.subr.bf16.mxu1 (!%p94_p7), %v797_v0  ;;  %692 = vmatprep.mubr.msk.bf16.mxu1 (!%p94_p7), %vm798_vm0, %v797_v0  ;;  %s801_s22 = smov (!%p94_p7), 88   ;;  %s120_s23 = sld [smem:[#allocation3 + %s837_s0]] (!%p94_p7)  ;;  %v123_v9 = vand.u32 (!%p94_p7), 127, %v122_v8 }
  0x17   : > { %s802_s24 = smov (!%p94_p7), 72   ;;  %s803_s25 = smov (!%p94_p7), 120  }
  0x18   : > { %s804_s26 = smov (!%p94_p7), 80   ;;  %s805_s27 = smov (!%p94_p7), 112  }
  0x19   : > { %s806_s28 = smov (!%p94_p7), 104   ;;  %s807_s29 = smov (!%p94_p7), 56  }
  0x1a   : > { %s808_s30 = smov (!%p94_p7), 48   ;;  %s809_s3 = smov (!%p94_p7), 40  }
  0x1b   : > { %s810_s4 = smov (!%p94_p7), 8   ;;  %s811_s5 = smov (!%p94_p7), 16  }
  0x1c   : > { %s846_s15 = scalar_select %p111_p8, %s837_s0, 1  ;;  %v124_v10 = vstv %s120_s23 }
  0x1d   : > { %vm868_vm2 = vcmp.lt.s32.totalorder %v123_v9, %v124_v10  ;;  %s812_s6 = smov 24  }
  0x1e   : > { %s655_s16 = sshll.u32 %s846_s15, 2 }
  0x1f   : > { %s114_s19 = scalar_lea.vmem %s935_s1, %s655_s16  ;;  %s118_s9 = scalar_lea.vmem %s936_s2, %s655_s16 }
  0x20   : > { %v121_v1 = vld [vmem:[%s114_s19] sm:$0xf] }
  0x21   : > { %v857_v2 = vcombine.low %v121_v1, %v121_v1  ;;  %v126_v3 = vunpack.c.l.bf16 %v121_v1 }
  0x23   : > { %132 = vrot.lane.b32.xlu0 %v857_v2, %s799_s20  ;;  %v127_v6 = vmul.f32 0.35355338, %v126_v3  ;;  %194 = vrot.lane.b32.xlu1 %v857_v2, %s800_s21 }
  0x25   : > { %v128_v7 = vpack.c.bf16 %v127_v6, %v127_v6 }
  0x27   : > { %246 = vrot.lane.b32.xlu1 %v857_v2, %s801_s22 }
  0x95   : > { %v133_v4 = vpop.permute.xlu0 %132  ;;  %v195_v18 = vpop.permute.xlu1 %194 }
  0x96   : > { %v139_v5 = vsel %vm134_vm1, %v133_v4, 0  ;;  %v201_v19 = vsel %vm199_vm3, %v195_v18, 0 }
  0x97   : > { %685 = vmatpush3.bf16.xpose.msra.mxu0 %v139_v5  ;;  %691 = vmatpush3.bf16.msra.mxu1 %v201_v19 }
  0x98   : > { %702 = vmatprep.subr.bf16.mxu0 %v797_v0  ;;  %696 = vmatprep.subr.bf16.mxu1 %v797_v0 }
  0x99   : > { %v247_v25 = vpop.permute.xlu1 %246 }
  0x9a   : > { %v252_v31 = vsel %vm134_vm1, %v247_v25, 0 }
  0x9e   : > { %687 = vmatmul.mubr.msk.bf16.vlgmr.msra.gmra.mrb[0].mxu0 %vm134_vm1, %v128_v7 }
  0x9f   : > { %704 = vmatprep.mubr.msk.bf16.mxu0 %vm798_vm0, %v797_v0 }
 0x171   : > { %v175_v12 = vpop.f32.mrb[0].mxu0 }
 0x172   : > { %v181_v13 = vsel %vm868_vm2, %v175_v12, -1e+09  ;;  %v688_v14 = vpop.f32.mrb[1].mxu0 }
 0x173   : > { %v178_v15 = vpop.f32.mrb[2].mxu0  ;;  %v182_v16 = vsel %vm134_vm1, %v181_v13, -inf }
 0x174   : > { %183 = vmax.xlane.f32.xlu0 %v182_v16  ;;  %v689_v17 = vpop.f32.mrb[3].mxu0 }
 0x18a   : > { %468 = vrot.lane.b32.xlu0 %v857_v2, %s802_s24 }
 0x201   : > { %v184_v20 = vpop.xlane.xlu0 %183 }
 0x202   : > { %v185_v21 = vsub.f32 %v181_v13, %v184_v20 }
 0x204   : > { %v186_v22 = vmul.f32 1.442695, %v185_v21 }
 0x205   : > { %v469_v34 = vpop.permute.xlu0 %468 }
 0x206   : > { %758 = vpow2.f32 %v186_v22  ;;  %v474_v36 = vsel %vm134_vm1, %v469_v34, 0 }
 0x210   : > { %v759_v23 = vpop.eup %758 }
 0x211   : > { %v188_v24 = vsel %vm134_vm1, %v759_v23, 0.0 }
 0x212   : > { %189 = vadd.xlane.f32.xlu1 %v188_v24 }
 0x223   : > { %244 = vrot.lane.b32.xlu1 %v128_v7, %s803_s25 }
 0x227   : > { %357 = vrot.lane.b32.xlu1 %v857_v2, %s804_s26 }
 0x22b   : > { %355 = vrot.lane.b32.xlu1 %v128_v7, %s805_s27 }
 0x22f   : > { %466 = vrot.lane.b32.xlu1 %v128_v7, %s806_s28 }
 0x29f   : > { %v190_v26 = vpop.xlane.xlu1 %189 }
 0x2a0   : > { %760 = vrcp.f32 %v190_v26 }
 0x2a3   : > { %v245_v29 = vpop.permute.xlu1 %244 }
 0x2a7   : > { %v358_v32 = vpop.permute.xlu1 %357 }
 0x2a8   : > { %v363_v33 = vsel %vm134_vm1, %v358_v32, 0 }
 0x2aa   : > { %v761_v27 = vpop.eup %760 }
 0x2ab   : > { %v192_v28 = vmul.f32 %v761_v27, %v759_v23  ;;  %v356_v35 = vpop.permute.xlu1 %355 }
 0x2ad   : > { %v193_v30 = vpack.c.bf16 %v192_v28, %v192_v28 }
 0x2af   : > { %693 = vmatmul.mubr.msk.bf16.vlgmr.msra.gmra.mrb[0].mxu1 %vm134_vm1, %v193_v30  ;;  %v467_v37 = vpop.permute.xlu1 %466 }
 0x2b0   : > { %697 = vmatpush3.bf16.xpose.msra.mxu1 %v252_v31  ;;  %698 = vmatprep.mubr.msk.bf16.mxu1 %vm798_vm0, %v797_v0 }
 0x2b1   : > { %708 = vmatprep.subr.bf16.mxu1 %v797_v0 }
 0x2b7   : > { %699 = vmatmul.mubr.msk.bf16.vlgmr.msra.gmra.mrb[4].mxu1 %vm134_vm1, %v245_v29 }
 0x2b8   : > { %709 = vmatpush3.bf16.xpose.msra.mxu1 %v363_v33  ;;  %710 = vmatprep.mubr.msk.bf16.mxu1 %vm798_vm0, %v797_v0 }
 0x2b9   : > { %720 = vmatprep.subr.bf16.mxu1 %v797_v0 }
 0x2bf   : > { %711 = vmatmul.mubr.msk.bf16.vlgmr.msra.gmra.mrb[8].mxu1 %vm134_vm1, %v356_v35 }
 0x2c0   : > { %721 = vmatpush3.bf16.xpose.msra.mxu1 %v474_v36  ;;  %722 = vmatprep.mubr.msk.bf16.mxu1 %vm798_vm0, %v797_v0 }
 0x2c7   : > { %723 = vmatmul.mubr.msk.bf16.vlgmr.msra.gmra.mrb[12].mxu1 %vm134_vm1, %v467_v37 }
 0x382   : > { %v895_v38 = vpop.f32.mrb[0].mxu1 }
 0x383   : > { %v694_v39 = vpop.f32.mrb[1].mxu1 }
 0x384   : > { %v240_v40 = vpop.f32.mrb[2].mxu1 }
 0x385   : > { %v695_v41 = vpop.f32.mrb[3].mxu1 }
 0x38a   : > { %v288_v42 = vpop.f32.mrb[4].mxu1 }
 0x38b   : > { %v294_v43 = vsel %vm868_vm2, %v288_v42, -1e+09  ;;  %v700_v44 = vpop.f32.mrb[5].mxu1 }
 0x38c   : > { %v291_v45 = vpop.f32.mrb[6].mxu1  ;;  %v295_v46 = vsel %vm134_vm1, %v294_v43, -inf }
 0x38d   : > { %296 = vmax.xlane.f32.xlu1 %v295_v46  ;;  %v701_v47 = vpop.f32.mrb[7].mxu1 }
 0x392   : > { %v399_v48 = vpop.f32.mrb[8].mxu1 }
 0x393   : > { %v405_v49 = vsel %vm868_vm2, %v399_v48, -1e+09  ;;  %v712_v50 = vpop.f32.mrb[9].mxu1 }
 0x394   : > { %v406_v51 = vsel %vm134_vm1, %v405_v49, -inf  ;;  %v402_v52 = vpop.f32.mrb[10].mxu1 }
 0x395   : > { %407 = vmax.xlane.f32.xlu0 %v406_v51  ;;  %v713_v53 = vpop.f32.mrb[11].mxu1 }
 0x39a   : > { %v510_v54 = vpop.f32.mrb[12].mxu1 }
 0x39b   : > { %v516_v55 = vsel %vm868_vm2, %v510_v54, -1e+09  ;;  %v724_v56 = vpop.f32.mrb[13].mxu1 }
 0x39c   : > { %v517_v57 = vsel %vm134_vm1, %v516_v55, -inf  ;;  %v513_v58 = vpop.f32.mrb[14].mxu1 }
 0x39d   : > { %518 = vmax.xlane.f32.xlu1 %v517_v57  ;;  %v725_v59 = vpop.f32.mrb[15].mxu1 }
 0x41a   : > { %v297_v60 = vpop.xlane.xlu1 %296 }
 0x41b   : > { %v298_v61 = vsub.f32 %v294_v43, %v297_v60 }
 0x41d   : > { %v299_v62 = vmul.f32 1.442695, %v298_v61 }
 0x41f   : > { %762 = vpow2.f32 %v299_v62 }
 0x422   : > { %v408_v8 = vpop.xlane.xlu0 %407 }
 0x423   : > { %v409_v9 = vsub.f32 %v405_v49, %v408_v8 }
 0x425   : > { %v410_v10 = vmul.f32 1.442695, %v409_v9 }
 0x429   : > { %v763_v63 = vpop.eup %762 }
 0x42a   : > { %v519_v1 = vpop.xlane.xlu1 %518  ;;  %v301_v3 = vsel %vm134_vm1, %v763_v63, 0.0 }
 0x42b   : > { %v520_v4 = vsub.f32 %v516_v55, %v519_v1  ;;  %302 = vadd.xlane.f32.xlu1 %v301_v3 }
 0x42d   : > { %v521_v5 = vmul.f32 1.442695, %v520_v4 }
 0x42f   : > { %764 = vpow2.f32 %v521_v5 }
 0x430   : > { %766 = vpow2.f32 %v410_v10 }
 0x439   : > { %v765_v6 = vpop.eup %764 }
 0x43a   : > { %v523_v7 = vsel %vm134_vm1, %v765_v6, 0.0  ;;  %v767_v11 = vpop.eup %766 }
 0x43b   : > { %524 = vadd.xlane.f32.xlu0 %v523_v7  ;;  %v412_v12 = vsel %vm134_vm1, %v767_v11, 0.0 }
 0x43c   : > { %307 = vrot.lane.b32.xlu1 %v857_v2, %s807_s29 }
 0x451   : > { %418 = vrot.lane.b32.xlu0 %v857_v2, %s808_s30 }
 0x460   : > { %413 = vadd.xlane.f32.xlu1 %v412_v12 }
 0x471   : > { %529 = vrot.lane.b32.xlu1 %v857_v2, %s809_s3 }
 0x4b8   : > { %v303_v13 = vpop.xlane.xlu1 %302 }
 0x4b9   : > { %768 = vrcp.f32 %v303_v13 }
 0x4bc   : > { %v308_v14 = vpop.permute.xlu1 %307 }
 0x4bd   : > { %v313_v15 = vsel %vm199_vm3, %v308_v14, 0 }
 0x4be   : > { %703 = vmatpush3.bf16.msra.mxu0 %v313_v15 }
 0x4bf   : > { %714 = vmatprep.subr.bf16.mxu0 %v797_v0 }
 0x4c3   : > { %v769_v16 = vpop.eup %768 }
 0x4c4   : > { %v305_v17 = vmul.f32 %v769_v16, %v763_v63 }
 0x4c6   : > { %v306_v18 = vpack.c.bf16 %v305_v17, %v305_v17 }
 0x4c8   : > { %705 = vmatmul.mubr.msk.bf16.vlgmr.msra.gmra.mrb[4].mxu0 %vm134_vm1, %v306_v18  ;;  %v525_v19 = vpop.xlane.xlu0 %524 }
 0x4c9   : > { %716 = vmatprep.mubr.msk.bf16.mxu0 %vm798_vm0, %v797_v0 }
 0x4cc   : > { %v419_v20 = vpop.permute.xlu0 %418 }
 0x4cd   : > { %v424_v2 = vsel %vm199_vm3, %v419_v20, 0 }
 0x4ce   : > { %715 = vmatpush3.bf16.msra.mxu0 %v424_v2 }
 0x4cf   : > { %726 = vmatprep.subr.bf16.mxu0 %v797_v0 }
 0x4ed   : > { %v414_v21 = vpop.xlane.xlu1 %413 }
 0x4ee   : > { %770 = vrcp.f32 %v414_v21 }
 0x4ef   : > { %772 = vrcp.f32 %v525_v19 }
 0x4f1   : > { %v530_v23 = vpop.permute.xlu1 %529 }
 0x4f2   : > { %v535_v25 = vsel %vm199_vm3, %v530_v23, 0 }
 0x4f8   : > { %v771_v22 = vpop.eup %770 }
 0x4f9   : > { %v416_v24 = vmul.f32 %v771_v22, %v767_v11  ;;  %v773_v27 = vpop.eup %772 }
 0x4fa   : > { %v527_v28 = vmul.f32 %v773_v27, %v765_v6 }
 0x4fb   : > { %v417_v26 = vpack.c.bf16 %v416_v24, %v416_v24 }
 0x4fc   : > { %v528_v29 = vpack.c.bf16 %v527_v28, %v527_v28 }
 0x4fd   : > { %717 = vmatmul.mubr.msk.bf16.vlgmr.msra.gmra.mrb[8].mxu0 %vm134_vm1, %v417_v26 }
 0x4fe   : > { %727 = vmatpush3.bf16.msra.mxu0 %v535_v25  ;;  %728 = vmatprep.mubr.msk.bf16.mxu0 %vm798_vm0, %v797_v0 }
 0x505   : > { %729 = vmatmul.mubr.msk.bf16.vlgmr.msra.gmra.mrb[12].mxu0 %vm134_vm1, %v528_v29 }
 0x59b   : > { %v349_v30 = vpop.f32.mrb[4].mxu0 }
 0x59c   : > { %578 = vrot.lane.b32.xlu1 %v349_v30, %s810_s4  ;;  %v706_v31 = vpop.f32.mrb[5].mxu0 }
 0x59d   : > { %v352_v32 = vpop.f32.mrb[6].mxu0 }
 0x59e   : > { %v707_v33 = vpop.f32.mrb[7].mxu0 }
 0x5d0   : > { %v460_v34 = vpop.f32.mrb[8].mxu0 }
 0x5d1   : > { %582 = vrot.lane.b32.xlu0 %v460_v34, %s811_s5  ;;  %v718_v35 = vpop.f32.mrb[9].mxu0 }
 0x5d2   : > { %v463_v36 = vpop.f32.mrb[10].mxu0 }
 0x5d3   : > { %v719_v37 = vpop.f32.mrb[11].mxu0 }
 0x5d8   : > { %v571_v39 = vpop.f32.mrb[12].mxu0 }
 0x5d9   : > { %586 = vrot.lane.b32.xlu1 %v571_v39, %s812_s6  ;;  %v730_v0 = vpop.f32.mrb[13].mxu0 }
 0x5da   : > { %v574_v40 = vpop.f32.mrb[14].mxu0 }
 0x5db   : > { %v731_v41 = vpop.f32.mrb[15].mxu0 }
 0x60e   : > { %v579_v42 = vpop.permute.xlu1 %578 }
 0x60f   : > { %v589_v44 = vsel %vm134_vm1, %v895_v38, %v579_v42 }
 0x643   : > { %v583_v43 = vpop.permute.xlu0 %582 }
 0x644   : > { %v591_v45 = vsel %vm590_vm4, %v589_v44, %v583_v43 }
 0x64b   : > { %v587_v46 = vpop.permute.xlu1 %586 }
 0x64c   : > { %v593_v47 = vsel %vm592_vm5, %v591_v45, %v587_v46 }
 0x64d   : > { %v594_v48 = vpack.c.bf16 %v593_v47, %v593_v47 }
 0x64f   : > { %596 = vst.msk [vmem:[%s118_s9] sm:$0xf] %vm595_vm6, %v594_v48 }
 0x650 PF: > { %s18_s14 = sadd.s32 1, %s794_s14  }
 0x651   : > { %p15_p9 = scmp.ge.s32.totalorder %s18_s14, 4  }
 0x653   :  { %17 = sbr.rel (!%p15_p9) target bundleno = 16 (0x10), region = 54 }

// kernel: encoder_block.10
= control target key start
LH: loop header
LB: loop body
LE: loop exit
PB: predicated region body
PF: predicated region fallthrough
CT: control target
= control target key end

     0   :  { %s621_s15 = smov 0   ;;  %s623_s16 = smov 0   ;;  %s670_s0 = inlined_call_operand.vmem [shape: bf16[16,32], index: 0, kind: input, shape index: {}]   ;;  %s671_s1 = inlined_call_operand.vmem [shape: bf16[32,32], index: 1, kind: input, shape index: {}]   ;;  %s672_s2 = inlined_call_operand.vmem [shape: f32[1,32], index: 2, kind: input, shape index: {}]   ;;  %s673_s3 = inlined_call_operand.vmem [shape: f32[16,32], index: 3, kind: input, shape index: {}]   ;;  %s674_s4 = inlined_call_operand.vmem [shape: f32[16,32], index: 4, kind: output, shape index: {}]  }
   0x1   :  { %s625_s17 = smov 0  }
   0x2 LB: > { %s33_s18 = sadd.s32 1, %s588_s16  ;;  %p521_p0 = scmp.ge.s32.totalorder %s592_s17, 1  ;;  %s592_s17 = sphi %s625_s17, %s14_s17   ;;  %s588_s16 = sphi %s623_s16, %s676_s16   ;;  %s584_s15 = sphi %s621_s15, %s675_s15  }
   0x3   : > { %p35_p1 = scmp.ge.s32.totalorder %s33_s18, 2  ;;  %p225_p2 = scmp.lt.s32.totalorder %s592_s17, 3 }
   0x5   : > { %s678_s18 = smov (%p35_p1, %s33_s18), 0  ;;  %p226_p3 = pnand %p521_p0, %p225_p2 }
   0x6   : > { %v568_v0 = vld [vmem:[%s671_s1] sm:$0xff] (!%p226_p3)   ;;  %v594_v1 = vmov (!%p226_p3), 0.0   ;;  %v569_v2 = vld [vmem:[%s671_s1 + $0x8] sm:$0xff] (!%p226_p3)   ;;  %vm595_vm0 = vmmov (!%p226_p3), 0   ;;  %p273_p4 = scmp.lt.s32.totalorder (!%p226_p3), %s584_s15, 1  ;;  %vm311_vm1 = vcmask (!%p226_p3), 261120  }
   0x7   : > { %229 = sbr.rel (%p226_p3) target bundleno = 245 (0xf5), region = 36  ;;  %534 = vmatprep.subr.bf16.mxu0 (!%p226_p3), %v594_v1  ;;  %538 = vmatprep.mubr.msk.bf16.mxu0 (!%p226_p3), %vm595_vm0, %v594_v1  ;;  %312 = vst.msk [vmem:[#allocation2] sm:$0xff] (!%p226_p3), %vm311_vm1, %v594_v1  ;;  %v528_v10 = vld [vmem:[%s672_s2] ss:$0 sm:$0xff] (!%p226_p3) }
   0x8   : > { %535 = vmatpush3.bf16.msra.mxu0 (!%p226_p3), %v568_v0 }
   0x9   : > { %536 = vmatprep.subr.bf16.mxu0 (!%p226_p3), %v594_v1 }
   0xc   : > { %537 = vmatpush3.bf16.msra.mxu0 (!%p226_p3), %v569_v2 }
   0xe   : > { %s680_s15 = smov (!%p273_p4, %s584_s15), 1  ;;  %v313_v4 = vld [vmem:[#allocation2] sm:$0xff] }
   0xf   : > { %s522_s23 = sshll.u32 %s680_s15, 2  ;;  %s523_s27 = sshll.u32 %s680_s15, 3 }
  0x10   : > { %s279_s26 = scalar_lea.vmem %s670_s0, %s522_s23  ;;  %s298_s30 = scalar_lea.vmem %s673_s3, %s523_s27 }
  0x11   : > { %v314_v3 = vld [vmem:[%s279_s26] sm:$0xf]  ;;  %s305_s9 = scalar_lea.vmem %s674_s4, %s523_s27 }
  0x12   : > { %539 = vmatmul.mubr.msk.bf16.vlgmr.msra.gmra.mrb[0].mxu0 %vm311_vm1, %v314_v3  ;;  %v389_v11 = vld [vmem:[%s298_s30] sm:$0xff] }
  0xe5   : > { %v369_v5 = vpop.f32.mrb[0].mxu0 }
  0xe6   : > { %v375_v6 = vadd.f32 %v369_v5, %v313_v4  ;;  %v540_v7 = vpop.f32.mrb[1].mxu0 }
  0xe7   : > { %v372_v8 = vpop.f32.mrb[2].mxu0 }
  0xe8   : > { %376 = vst.msk [vmem:[#allocation2] sm:$0xff] %vm311_vm1, %v375_v6  ;;  %v541_v9 = vpop.f32.mrb[3].mxu0 }
  0xef   : > { %v380_v12 = vld [vmem:[#allocation2] sm:$0xff] }
  0xf0   : > { %v388_v13 = vadd.f32 %v528_v10, %v380_v12 }
  0xf2   : > { %v390_v14 = vadd.f32 %v389_v11, %v388_v13 }
  0xf4   : > { %391 = vst.msk [vmem:[%s305_s9] sm:$0xff] %vm311_vm1, %v390_v14 }
  0xf5 PF: > { %s14_s17 = sadd.s32 1, %s592_s17   ;;  %s675_s15 = smov %s588_s16 }
  0xf6   : > { %p11_p5 = scmp.ge.s32.totalorder %s14_s17, 4   ;;  %s676_s16 = smov %s678_s18 }
  0xf8   :  { %13 = sbr.rel (!%p11_p5) target bundleno = 2 (0x2), region = 83 }

// kernel: encoder_block.12
= control target key start
LH: loop header
LB: loop body
LE: loop exit
PB: predicated region body
PF: predicated region fallthrough
CT: control target
= control target key end

     0   :  { %s547_s12 = smov 0   ;;  %s549_s13 = smov 0   ;;  %s591_s0 = inlined_call_operand.vmem [shape: bf16[16,32], index: 0, kind: input, shape index: {}]   ;;  %s592_s1 = inlined_call_operand.vmem [shape: bf16[32,64], index: 1, kind: input, shape index: {}]   ;;  %s593_s2 = inlined_call_operand.vmem [shape: f32[1,64], index: 2, kind: input, shape index: {}]   ;;  %s594_s3 = inlined_call_operand.vmem [shape: bf16[16,64], index: 3, kind: output, shape index: {}]  }
   0x1   :  { %s551_s14 = smov 0  }
   0x2 LB: > { %s32_s15 = sadd.s32 1, %s519_s13  ;;  %p453_p0 = scmp.ge.s32.totalorder %s523_s14, 1  ;;  %s523_s14 = sphi %s551_s14, %s13_s14   ;;  %s519_s13 = sphi %s549_s13, %s596_s13   ;;  %s515_s12 = sphi %s547_s12, %s595_s12  }
   0x3   : > { %p34_p1 = scmp.ge.s32.totalorder %s32_s15, 2  ;;  %p186_p2 = scmp.lt.s32.totalorder %s523_s14, 3 }
   0x5   : > { %s598_s15 = smov (%p34_p1, %s32_s15), 0  ;;  %p187_p3 = pnand %p453_p0, %p186_p2 }
   0x6   : > { %vm256_vm0 = vcmask (!%p187_p3), 523264   ;;  %v525_v0 = vmov (!%p187_p3), 0.0   ;;  %v499_v1 = vld [vmem:[%s592_s1] sm:$0xff] (!%p187_p3)   ;;  %vm526_vm1 = vmmov (!%p187_p3), 0   ;;  %p225_p4 = scmp.lt.s32.totalorder (!%p187_p3), %s515_s12, 1  ;;  %v500_v2 = vld [vmem:[%s592_s1 + $0x8] sm:$0xff] (!%p187_p3)  }
   0x7   : > { %190 = sbr.rel (%p187_p3) target bundleno = 247 (0xf7), region = 32  ;;  %257 = vst.msk [vmem:[#allocation2] sm:$0xff] (!%p187_p3), %vm256_vm0, %v525_v0  ;;  %465 = vmatprep.subr.bf16.mxu0 (!%p187_p3), %v525_v0  ;;  %469 = vmatprep.mubr.msk.bf16.mxu0 (!%p187_p3), %vm526_vm1, %v525_v0  ;;  %vm276_vm2 = vcmask (!%p187_p3), 261120   ;;  %v459_v10 = vld [vmem:[%s593_s2] ss:$0 sm:$0xff] (!%p187_p3)  ;;  %vm337_vm3 = vcmask (!%p187_p3), 519168  }
   0x8   : > { %466 = vmatpush3.bf16.msra.mxu0 (!%p187_p3), %v499_v1 }
   0x9   : > { %467 = vmatprep.subr.bf16.mxu0 (!%p187_p3), %v525_v0 }
   0xc   : > { %468 = vmatpush3.bf16.msra.mxu0 (!%p187_p3), %v500_v2 }
   0xe   : > { %s600_s12 = smov (!%p225_p4, %s515_s12), 1  ;;  %v258_v4 = vld [vmem:[#allocation2] sm:$0xff] }
   0xf   : > { %s454_s20 = sshll.u32 %s600_s12, 2 }
  0x10   : > { %s231_s23 = scalar_lea.vmem %s591_s0, %s454_s20  ;;  %s250_s28 = scalar_lea.vmem %s594_s3, %s454_s20 }
  0x11   : > { %v259_v3 = vld [vmem:[%s231_s23] sm:$0xf] }
  0x12   : > { %470 = vmatmul.mubr.msk.bf16.vlgmr.msra.gmra.mrb[0].mxu0 %vm276_vm2, %v259_v3 }
  0xe5   : > { %v314_v5 = vpop.f32.mrb[0].mxu0 }
  0xe6   : > { %v320_v6 = vadd.f32 %v314_v5, %v258_v4  ;;  %v471_v7 = vpop.f32.mrb[1].mxu0 }
  0xe7   : > { %v317_v8 = vpop.f32.mrb[2].mxu0 }
  0xe8   : > { %322 = vst.msk [vmem:[#allocation2] sm:$0xff] %vm256_vm0, %v320_v6  ;;  %v472_v9 = vpop.f32.mrb[3].mxu0 }
  0xef   : > { %v326_v11 = vld [vmem:[#allocation2] sm:$0xff] }
  0xf0   : > { %v334_v12 = vadd.f32 %v459_v10, %v326_v11 }
  0xf2   : > { %v335_v13 = vmax.f32 %v334_v12, 0.0 }
  0xf4   : > { %v336_v14 = vpack.c.bf16 %v335_v13, %v335_v13 }
  0xf6   : > { %338 = vst.msk [vmem:[%s250_s28] sm:$0xf] %vm337_vm3, %v336_v14 }
  0xf7 PF: > { %s13_s14 = sadd.s32 1, %s523_s14   ;;  %s595_s12 = smov %s519_s13 }
  0xf8   : > { %p10_p5 = scmp.ge.s32.totalorder %s13_s14, 4   ;;  %s596_s13 = smov %s598_s15 }
  0xfa   :  { %12 = sbr.rel (!%p10_p5) target bundleno = 2 (0x2), region = 76 }

// kernel: encoder_block.13
= control target key start
LH: loop header
LB: loop body
LE: loop exit
PB: predicated region body
PF: predicated region fallthrough
CT: control target
= control target key end

     0   :  { %9 = vsyncpa [#allocation4], 0  ;;  %s876_s0 = inlined_call_operand.vmem [shape: bf16[16,64], index: 0, kind: input, shape index: {}]   ;;  %s877_s1 = inlined_call_operand.vmem [shape: bf16[64,32], index: 1, kind: input, shape index: {}]   ;;  %s878_s2 = inlined_call_operand.vmem [shape: f32[1,32], index: 2, kind: input, shape index: {}]   ;;  %s879_s3 = inlined_call_operand.vmem [shape: f32[16,32], index: 3, kind: input, shape index: {}]   ;;  %s880_s4 = inlined_call_operand.hbm [shape: f32[16,32], index: 4, kind: output, shape index: {}]  }
   0x1   :  { %11 = vsyncpa [#allocation4 + $0x1], 0  ;;  %s743_s15 = smov 0   ;;  %s745_s16 = smov 0  }
   0x2   :  { %s747_s17 = smov 0   ;;  %s749_s18 = smov 0  }
   0x3   :  { %s751_s19 = smov 0   ;;  %s753_s20 = smov 0  }
   0x4 LB: > { %s537_s21 = sadd.s32 4294967295, %s713_s20   ;;  %s538_s22 = sadd.s32 4294967294, %s713_s20   ;;  %s713_s20 = sphi %s753_s20, %s17_s20   ;;  %s709_s19 = sphi %s751_s19, %s887_s19   ;;  %s705_s18 = sphi %s749_s18, %s886_s18   ;;  %s701_s17 = sphi %s747_s17, %s885_s17   ;;  %s697_s16 = sphi %s745_s16, %s884_s16   ;;  %s693_s15 = sphi %s743_s15, %s883_s15  }
   0x5   : > { %s36_s23 = sadd.s32 1, %s709_s19  ;;  %s155_s24 = sadd.s32 1, %s701_s17 }
   0x6   : > { %p38_p0 = scmp.ge.s32.totalorder %s36_s23, 2  ;;  %p165_p1 = scmp.ne.s32.totalorder %s701_s17, %s697_s16 }
   0x7   : > { %p166_p2 = scmp.eq.s32.totalorder %s537_s21, 1  ;;  %p171_p3 = scmp.ne.s32.totalorder %s697_s16, %s693_s15 }
   0x8   : > { %s889_s23 = smov (%p38_p0, %s36_s23), 0  ;;  %p172_p5 = scmp.eq.s32.totalorder %s538_s22, 1 }
   0x9   : > { %p783_p4 = por %p166_p2, %p165_p1  ;;  %s150_s26 = ssub.s32 %s709_s19, %s889_s23 }
   0xa   : > { %p543_p6 = scmp.ge.s32.totalorder %s713_s20, 1  ;;  %p153_p7 = scmp.eq.s32.totalorder %s150_s26, 0 }
   0xb   : > { %p790_p8 = por %p172_p5, %p171_p3  ;;  %p228_p9 = scmp.lt.s32.totalorder %s713_s20, 3 }
   0xc   : > { %s796_s28 = scalar_select %p153_p7, %s701_s17, %s155_s24  }
   0xd   : > { %p229_p10 = pnand %p543_p6, %p228_p9 }
   0xe   : > { %v631_v0 = vld [vmem:[%s877_s1] sm:$0xff] (!%p229_p10)   ;;  %v715_v1 = vmov (!%p229_p10), 0.0   ;;  %v632_v2 = vld [vmem:[%s877_s1 + $0x8] sm:$0xff] (!%p229_p10)   ;;  %vm716_vm0 = vmmov (!%p229_p10), 0   ;;  %p274_p11 = scmp.lt.s32.totalorder (!%p229_p10), %s705_s18, 1  ;;  %vm305_vm1 = vcmask (!%p229_p10), 261120  }
   0xf   : > { %232 = sbr.rel (%p229_p10) target bundleno = 271 (0x10f), region = 36  ;;  %562 = vmatprep.subr.bf16.mxu0 (!%p229_p10), %v715_v1  ;;  %570 = vmatprep.mubr.msk.bf16.mxu0 (!%p229_p10), %vm716_vm0, %v715_v1  ;;  %306 = vst.msk [vmem:[#allocation2] sm:$0xff] (!%p229_p10), %vm305_vm1, %v715_v1  ;;  %v633_v3 = vld [vmem:[%s877_s1 + $0x10] sm:$0xff] (!%p229_p10)   ;;  %v634_v4 = vld [vmem:[%s877_s1 + $0x18] sm:$0xff] (!%p229_p10)   ;;  %vm341_vm2 = vcmask (!%p229_p10), 523264   ;;  %s271_s22 = sand.u32 (!%p229_p10), 1, %s697_s16  }
  0x10   : > { %563 = vmatpush3.bf16.msra.mxu0 (!%p229_p10), %v631_v0  ;;  %s544_s26 = sshll.u32 (!%p229_p10), %s271_s22, 3  ;;  %v552_v12 = vld [vmem:[%s878_s2] ss:$0 sm:$0xff] (!%p229_p10)  ;;  %s554_s9 = sshll.u32 (!%p229_p10), %s705_s18, 7 }
  0x11   : > { %564 = vmatprep.subr.bf16.mxu0 (!%p229_p10), %v715_v1  ;;  %s404_s14 = scalar_lea.sflag (!%p229_p10), [#allocation4], %s271_s22 }
  0x14   : > { %565 = vmatpush3.bf16.msra.mxu0 (!%p229_p10), %v632_v2 }
  0x15   : > { %566 = vmatprep.subr.bf16.mxu0 (!%p229_p10), %v715_v1 }
  0x16   : > { %s275_s7 = scalar_select %p274_p11, %s705_s18, 1  ;;  %v307_v6 = vld [vmem:[#allocation2] sm:$0xff] }
  0x17   : > { %s717_s18 = smov [#allocation3]  }
  0x18   : > { %s545_s10 = sshll.u32 %s275_s7, 2  ;;  %567 = vmatpush3.bf16.msra.mxu0 %v633_v3  ;;  %s546_s24 = sshll.u32 %s275_s7, 3 }
  0x19   : > { %568 = vmatprep.subr.bf16.mxu0 %v715_v1  ;;  %s280_s21 = scalar_lea.vmem %s876_s0, %s545_s10  ;;  %s299_s5 = scalar_lea.vmem %s879_s3, %s546_s24 }
  0x1a   : > { %v308_v5 = vld [vmem:[%s280_s21] sm:$0xf]  ;;  %s273_s10 = scalar_lea.vmem [#allocation3], %s544_s26  ;;  %s828_s7 = scalar_lea.hbm %s880_s4, %s554_s9 }
  0x1b   : > { %v400_v13 = vld [vmem:[%s299_s5] sm:$0xff]  ;;  %s418_s11 = sshll.u32 %s273_s10, 4  ;;  %s639_s24 = sshll.u32 %s717_s18, 4  ;;  %s830_s11 = int_to_ptr.vmem [resolvable:$true] %s418_s11  ;;  %s640_s24 = int_to_ptr.vmem [resolvable:$false] %s639_s24 }
  0x1c   : > { %569 = vmatpush3.bf16.msra.mxu0 %v634_v4  ;;  %s635_s21 = scalar_lea.vmem %s830_s11, 128  ;;  %s641_s26 = scalar_lea.vmem %s640_s24, 256 }
  0x1d   : > { %p636_p12 = scmp.ne.s32.totalorder %s830_s11, %s635_s21  ;;  %p642_p1 = scmp.lt.s32.totalorder %s830_s11, %s640_s24 }
  0x1e   : > { %p643_p2 = scmp.lt.s32.totalorder %s641_s26, %s635_s21 }
  0x1f   : > { %571 = vmatmul.mubr.msk.bf16.vlgmr.msra.gmra.mrb[0].mxu0 %vm341_vm2, %v308_v5  ;;  %p637_p13 = pnand %p636_p12, %p783_p4 }
  0x20   : > { %p644_p3 = por %p643_p2, %p642_p1 }
  0x21   : > { %p638_p0 = pneg %p637_p13 }
  0x23   : > { %p645_p5 = pnand %p644_p3, %p638_p0 }
  0xf2   : > { %v379_v7 = vpop.f32.mrb[0].mxu0 }
  0xf3   : > { %v385_v8 = vadd.f32 %v379_v7, %v307_v6  ;;  %v572_v9 = vpop.f32.mrb[1].mxu0 }
  0xf4   : > { %v382_v10 = vpop.f32.mrb[2].mxu0 }
  0xf5   : > { %387 = vst.msk [vmem:[#allocation2] sm:$0xff] %vm305_vm1, %v385_v8  ;;  %v573_v11 = vpop.f32.mrb[3].mxu0 }
  0xfc   : > { %v391_v14 = vld [vmem:[#allocation2] sm:$0xff] }
  0xfd   : > { %v399_v15 = vadd.f32 %v552_v12, %v391_v14 }
  0xff   : > { %v401_v16 = vadd.f32 %v400_v13, %v399_v15 }
 0x101   : > { %402 = vst.msk [vmem:[%s273_s10] sm:$0xff] %vm305_vm1, %v401_v16 }
 0x102   : > { %648 = shalt.err (!%p645_p5)
}
 0x103   : > { %s649_s22 = scalar_lea.hbm %s828_s7, 128  ;;  %s653_s5 = scalar_lea.hbm %s880_s4, 256 }
 0x104   : > { %p650_p6 = scmp.ne.s32.totalorder %s828_s7, %s649_s22  ;;  %p654_p10 = scmp.lt.u32.totalorder %s828_s7, %s880_s4 }
 0x105   : > { %p655_p11 = scmp.lt.u32.totalorder %s653_s5, %s649_s22  ;;  %p657_p13 = scmp.lt.u32.totalorder %s649_s22, %s828_s7 }
 0x106   : > { %p651_p7 = pnand %p650_p6, %p783_p4 }
 0x107   : > { %p656_p12 = por %p655_p11, %p654_p10 }
 0x108   : > { %p652_p9 = pneg %p651_p7 }
 0x109   : > { %p658_p0 = por %p657_p13, %p656_p12 }
 0x10b   : > { %p659_p1 = pnand %p658_p0, %p652_p9 }
 0x10d   : > { %662 = shalt.err (!%p659_p1)
}
 0x10e   : > { %574 = dma.vmem_to_hbm [thread:$0]  (%p783_p4), %s830_s11, 128, %s828_s7, %s404_s14  }
 0x10f PF: > { %p580_p2 = scmp.ge.s32.totalorder %s713_s20, 2  ;;  %s430_s9 = sand.u32 1, %s693_s15  }
 0x110   : > { %s431_s10 = scalar_lea.sflag [#allocation4], %s430_s9 }
 0x111   : > { %p577_p3 = pnand %p580_p2, %p790_p8 }
 0x113   : > { %688 = dma.done.wait (!%p577_p3), %s431_s10, 128  }
 0x114   : > { %690 = vsyncadd (!%p577_p3), %s431_s10, 4294967168  ;;  %s17_s20 = sadd.s32 1, %s713_s20   ;;  %s883_s15 = smov %s697_s16 }
 0x115   : > { %p14_p5 = scmp.ge.s32.totalorder %s17_s20, 4   ;;  %s884_s16 = smov %s701_s17 }
 0x116   : > { %s885_s17 = smov %s796_s28  ;;  %s886_s18 = smov %s709_s19 }
 0x117   : > { %s887_s19 = smov %s889_s23  ;;  %16 = sbr.rel (!%p14_p5) target bundleno = 4 (0x4), region = 88 }
 0x11e   :  { %436 = vsyncpa [#allocation4], 1 }
 0x11f   :  { %438 = vsyncpa [#allocation4 + $0x1], 1 }

</bundles_post_ra>
